<compile_context>
chip_gen: v6e
topology: v6e:2x2x1
jax: 0.10.0
libtpu: 0.0.40
codegen_flags: <defaults>
</compile_context>

<pallas_src>
import functools

import jax
import jax.numpy as jnp
import numpy as np
from jax.experimental import pallas as pl
from jax.experimental.pallas import tpu as pltpu

NORM_CHANNELS = 8
_EPS = 1e-5


def _cdiv(a, b):
    return (a + b - 1) // b


def _default_tile_and_vmem():
    """Generation-aware (tile_l, vmem_limit_bytes) defaults."""
    try:
        vmem_cap = int(pltpu.get_tpu_info().vmem_capacity_bytes)
    except Exception:
        return 1024, None                      # unknown chip: compiler default
    if vmem_cap >= 96 * 1024 * 1024:           # v5e / v6e (128 MiB physical)
        return 2048, 96 * 1024 * 1024
    return 1024, 40 * 1024 * 1024              # v7x (64 MiB physical)


def _tile_index_map(b, t):
    return (b, 0, t)


def _halo_index_map(n128):
    # Halo block index is in units of 128 lanes; Lt is a multiple of 128.
    return lambda b, t: (b, 0, (t + 1) * n128)


# -----------------------------------------------------------------------------
# Kernel 1: [optional per-input GN-affine + ReLU] -> Conv1d(stride=1, bf16)
#           -> bias -> per-channel sum / sum-sq accumulation (f32).
# -----------------------------------------------------------------------------
def _conv_stats_kernel(*refs, pre_norm, K, Lt, L_valid):
    num_inputs = len(pre_norm)
    n_act = sum(3 if p else 2 for p in pre_norm)
    act_refs = refs[:n_act]
    w_refs = refs[n_act:n_act + num_inputs]
    b_ref = refs[n_act + num_inputs]
    y_ref, stats_ref = refs[n_act + num_inputs + 1:]

    cout = y_ref.shape[1]
    acc = jnp.zeros((cout, Lt), jnp.float32)

    idx = 0
    for i in range(num_inputs):
        x_cur = act_refs[idx][0]                       # (Ci, Lt)   bf16
        halo = act_refs[idx + 1][0]                    # (Ci, 128)  bf16
        idx += 2
        win = jnp.concatenate([x_cur, halo], axis=1)   # (Ci, Lt+128) lane-aligned
        if pre_norm[i]:
            aff = act_refs[idx][0]                     # (2, Ci, 1) f32
            idx += 1
            win = jnp.maximum(win.astype(jnp.float32) * aff[0] + aff[1], 0.0)
            win = win.astype(jnp.bfloat16)
        wr = w_refs[i]                                 # (K, Cout, Ci) bf16
        for k in range(K):                             # K accumulating MXU dots
            acc = acc + jnp.dot(wr[k], win[:, k:k + Lt],
                                preferred_element_type=jnp.float32)

    y = acc + b_ref[...]                               # (Cout, Lt) f32

    # GroupNorm phase 1: per-channel sum / sum-sq over valid output columns.
    t = pl.program_id(1)
    mask_from = L_valid // Lt        # first tile index with any invalid column

    @pl.when(t == 0)
    def _init():
        stats_ref[...] = jnp.zeros_like(stats_ref)

    @pl.when(t < mask_from)
    def _interior():
        stats_ref[0, 0] += jnp.sum(y, axis=1, keepdims=True)
        stats_ref[0, 1] += jnp.sum(y * y, axis=1, keepdims=True)

    @pl.when(t >= mask_from)
    def _tail():
        col = jax.lax.broadcasted_iota(jnp.int32, (1, Lt), 1) + t * Lt
        ym = jnp.where(col < L_valid, y, 0.0)
        stats_ref[0, 0] += jnp.sum(ym, axis=1, keepdims=True)
        stats_ref[0, 1] += jnp.sum(ym * ym, axis=1, keepdims=True)

    y_ref[0] = y.astype(y_ref.dtype)


def _fused_conv_stats(inputs, weights, bias, *, K, Lt, grid_t, L_valid, cout,
                      vmem_limit):
    """One time-tiled conv layer with fused GroupNorm statistics.

    inputs : list of (x_pad, affine) pairs.
             x_pad  : (B, Ci, >= grid_t*Lt + 128) bf16 activation stream.
             affine : (B, 2, Ci, 1) f32 [scale, shift] of the producer's GN
                      (GN+ReLU folded onto this input path), or None.
    weights: list of (K, cout, Ci) arrays, one per input stream.
    """
    B = inputs[0][0].shape[0]
    assert L_valid <= grid_t * Lt
    n128 = Lt // 128
    operands, in_specs, pre_norm = [], [], []
    for x_pad, aff in inputs:
        Ci = x_pad.shape[1]
        assert x_pad.shape[0] == B and x_pad.shape[2] >= grid_t * Lt + 128
        operands += [x_pad, x_pad]
        in_specs += [pl.BlockSpec((1, Ci, Lt), _tile_index_map),
                     pl.BlockSpec((1, Ci, 128), _halo_index_map(n128))]
        if aff is not None:
            operands.append(aff)
            in_specs.append(pl.BlockSpec((1, 2, Ci, 1),
                                         lambda b, t: (b, 0, 0, 0)))
        pre_norm.append(aff is not None)
    for w in weights:
        w = jnp.asarray(w, jnp.bfloat16)
        operands.append(w)
        in_specs.append(pl.BlockSpec(w.shape, lambda b, t: (0, 0, 0)))
    operands.append(bias.reshape(cout, 1).astype(jnp.float32))
    in_specs.append(pl.BlockSpec((cout, 1), lambda b, t: (0, 0)))

    kernel = functools.partial(_conv_stats_kernel, pre_norm=tuple(pre_norm),
                               K=K, Lt=Lt, L_valid=L_valid)

    y_raw, stats = pl.pallas_call(
        kernel,
        out_shape=(
            jax.ShapeDtypeStruct((B, cout, grid_t * Lt), jnp.bfloat16),
            jax.ShapeDtypeStruct((B, 2, cout, 1), jnp.float32),
        ),
        grid=(B, grid_t),
        in_specs=in_specs,
        out_specs=(
            pl.BlockSpec((1, cout, Lt), _tile_index_map),
            pl.BlockSpec((1, 2, cout, 1), lambda b, t: (b, 0, 0, 0)),
        ),
        compiler_params=pltpu.CompilerParams(
            dimension_semantics=("parallel", "arbitrary"),
            vmem_limit_bytes=vmem_limit),
    )(*operands)
    return y_raw, stats


# -----------------------------------------------------------------------------
# Kernel 2: final GroupNorm affine + ReLU, writing the cropped output directly.
# -----------------------------------------------------------------------------
def _norm_relu_crop_kernel(y_ref, aff_ref, o_ref):
    y = y_ref[0].astype(jnp.float32)
    aff = aff_ref[0]
    o_ref[0] = jnp.maximum(y * aff[0] + aff[1], 0.0).astype(o_ref.dtype)


def _norm_relu_crop(y_raw, affine, *, Lt, L_out, out_dtype, vmem_limit):
    B, C, Lp = y_raw.shape
    nt = Lp // Lt
    return pl.pallas_call(
        _norm_relu_crop_kernel,
        out_shape=jax.ShapeDtypeStruct((B, C, L_out), out_dtype),
        grid=(B, nt),
        in_specs=[pl.BlockSpec((1, C, Lt), _tile_index_map),
                  pl.BlockSpec((1, 2, C, 1), lambda b, t: (b, 0, 0, 0))],
        out_specs=pl.BlockSpec((1, C, Lt), _tile_index_map),
        compiler_params=pltpu.CompilerParams(
            dimension_semantics=("parallel", "arbitrary"),
            vmem_limit_bytes=vmem_limit),
    )(y_raw, affine)


# -----------------------------------------------------------------------------
# Tiny XLA glue: group reduction of the stats, weight repacking.
# -----------------------------------------------------------------------------
def _stats_to_affine(stats, gamma, beta, num_groups, l_valid, eps=_EPS):
    """(B, 2, C, 1) [sum, sumsq] -> (B, 2, C, 1) [scale, shift] for y*s+b."""
    # TODO(synk): single-pass E[x^2]-E[x]^2 can cancel for very long audio;
    # switch to a mean-shifted / Welford accumulation before scaling L up.
    B, _, C, _ = stats.shape
    gs = C // num_groups
    g = stats[:, :, :, 0].reshape(B, 2, num_groups, gs).sum(axis=3)  # (B,2,G)
    cnt = float(gs * l_valid)
    mean = g[:, 0] / cnt
    var = jnp.maximum(g[:, 1] / cnt - mean * mean, 0.0)
    inv = jax.lax.rsqrt(var + eps)
    mean_c = jnp.repeat(mean, gs, axis=1)
    inv_c = jnp.repeat(inv, gs, axis=1)
    scale = inv_c * gamma[None, :]
    shift = beta[None, :] - mean_c * scale
    return jnp.stack([scale, shift], axis=1)[..., None].astype(jnp.float32)


# -----------------------------------------------------------------------------
# UpsamplingBlock forward
# -----------------------------------------------------------------------------
def upsampling_block_forward(x, shortcut, params, *, kernel_size, stride,
                             tile_l=None, vmem_limit_bytes=None,
                             out_dtype=jnp.float32):
    K = kernel_size
    if tile_l is None or vmem_limit_bytes is None:
        d_tile, d_vmem = _default_tile_and_vmem()
        tile_l = d_tile if tile_l is None else tile_l
        vmem_limit_bytes = d_vmem if vmem_limit_bytes is None else vmem_limit_bytes
    Lt = tile_l
    assert Lt % 128 == 0 and Lt >= 128
    assert 1 <= K <= 129                    # K-1 halo fits in one 128-lane block

    B, c_in, L_in = x.shape
    _, c_sh, L_sh = shortcut.shape

    w_up, b_up, g_up, be_up = params["upconv"]        # (Cin, C1, K) transpose
    w_pre, b_pre, g_pre, be_pre = params["pre"]       # (C2, C1, K)
    w_post, b_post, g_post, be_post = params["post"]  # (C3, Csh+C2, K)
    C1, C2, C3 = w_up.shape[1], w_pre.shape[0], w_post.shape[0]
    for c in (C1, C2, C3):
        assert c % NORM_CHANNELS == 0

    # Static length bookkeeping (mirrors ConvLayer.get_output_size).
    L1 = (L_in - 1) * stride + K            # upconv output length
    L2 = L1 - K + 1                         # pre_shortcut_conv output length
    diff = (L_sh - L2) // 2                 # center_crop(shortcut, upsampled)
    assert diff >= 0 and (L_sh - L2) % 2 == 0
    Lc = L2                                 # combined length after crops
    L3 = Lc - K + 1                         # post_shortcut_conv output length

    # Back-to-front grid sizing: each layer's padded output (grid*Lt) covers
    # its consumer's grid*Lt + one 128-lane halo block.
    g3 = _cdiv(L3, Lt)
    g2 = g3 + 1
    g1 = g2 + 1
    assert L1 <= g1 * Lt and L2 <= g2 * Lt and L3 <= g3 * Lt

    # ---- layer 1: ConvTranspose1d as a zero-stuffed stride-1 conv ----------
    # (stuffing built with concat+reshape, no strided scatter)
    Lu = (L_in - 1) * stride + 1
    x_b = x.astype(jnp.bfloat16)
    x_up = jnp.concatenate(
        [x_b[..., None],
         jnp.zeros((B, c_in, L_in, stride - 1), jnp.bfloat16)],
        axis=-1).reshape(B, c_in, L_in * stride)[..., :Lu]
    total1 = g1 * Lt + 128
    x_l1 = jnp.pad(x_up, ((0, 0), (0, 0), (K - 1, total1 - (K - 1) - Lu)))
    w1 = jnp.flip(w_up, axis=2).transpose(2, 1, 0)          # (K, C1, Cin)
    y1_raw, stats1 = _fused_conv_stats(
        [(x_l1, None)], [w1], b_up,
        K=K, Lt=Lt, grid_t=g1, L_valid=L1, cout=C1,
        vmem_limit=vmem_limit_bytes)
    aff1 = _stats_to_affine(stats1, g_up, be_up, C1 // NORM_CHANNELS, L1)

    # ---- layer 2: pre_shortcut_conv (upconv's GN+ReLU folded into input) ---
    w2 = w_pre.transpose(2, 0, 1)                           # (K, C2, C1)
    y2_raw, stats2 = _fused_conv_stats(
        [(y1_raw, aff1)], [w2], b_pre,
        K=K, Lt=Lt, grid_t=g2, L_valid=L2, cout=C2,
        vmem_limit=vmem_limit_bytes)
    aff2 = _stats_to_affine(stats2, g_pre, be_pre, C2 // NORM_CHANNELS, L2)

    # ---- layer 3: post_shortcut_conv with the channel concat fused ---------
    sc = jax.lax.slice_in_dim(shortcut, diff, diff + Lc, axis=2) if diff > 0 \
        else shortcut
    sc_pad = jnp.pad(sc.astype(jnp.bfloat16),
                     ((0, 0), (0, 0), (0, g3 * Lt + 128 - Lc)))
    w3_sc = w_post[:, :c_sh, :].transpose(2, 0, 1)          # (K, C3, Csh)
    w3_up = w_post[:, c_sh:, :].transpose(2, 0, 1)          # (K, C3, C2)
    y3_raw, stats3 = _fused_conv_stats(
        [(sc_pad, None), (y2_raw, aff2)], [w3_sc, w3_up], b_post,
        K=K, Lt=Lt, grid_t=g3, L_valid=L3, cout=C3,
        vmem_limit=vmem_limit_bytes)
    aff3 = _stats_to_affine(stats3, g_post, be_post, C3 // NORM_CHANNELS, L3)

    # ---- finalize: GN + ReLU, cropped write (tail-tile store is masked) ----
    return _norm_relu_crop(y3_raw, aff3, Lt=Lt, L_out=L3, out_dtype=out_dtype,
                           vmem_limit=vmem_limit_bytes)


# -----------------------------------------------------------------------------
# Pure-JAX f32 reference (correctness check)
# -----------------------------------------------------------------------------
def center_crop(x, target):
    if x is None or target is None:
        return x
    difference = (x.shape[-1] - target.shape[-1]) // 2
    if difference < 0:
        raise ArithmeticError
    return x if difference == 0 else x[..., difference:x.shape[-1] - difference]


def _ref_gn_relu(y, gamma, beta, num_groups, eps=_EPS):
    B, C, L = y.shape
    g = y.reshape(B, num_groups, (C // num_groups) * L)
    mean = g.mean(-1, keepdims=True)
    var = g.var(-1, keepdims=True)
    g = (g - mean) / jnp.sqrt(var + eps)
    y = g.reshape(B, C, L) * gamma[None, :, None] + beta[None, :, None]
    return jnp.maximum(y, 0.0)


def _ref_conv_layer(x, params, *, kernel_size, stride, transpose):
    w, b, gamma, beta = params
    if transpose:
        w_eff = jnp.flip(w, 2).transpose(1, 0, 2)
        y = jax.lax.conv_general_dilated(
            x, w_eff, window_strides=(1,),
            padding=[(kernel_size - 1, kernel_size - 1)],
            lhs_dilation=(stride,),
            dimension_numbers=("NCH", "OIH", "NCH"))
    else:
        y = jax.lax.conv_general_dilated(
            x, w, window_strides=(stride,), padding="VALID",
            dimension_numbers=("NCH", "OIH", "NCH"))
    y = y + b[None, :, None]
    return _ref_gn_relu(y, gamma, beta,
                        w.shape[1 if transpose else 0] // NORM_CHANNELS)


def _ref_upsampling_block(x, shortcut, params, *, kernel_size, stride):
    up = _ref_conv_layer(x, params["upconv"], kernel_size=kernel_size,
                         stride=stride, transpose=True)
    up = _ref_conv_layer(up, params["pre"], kernel_size=kernel_size,
                         stride=1, transpose=False)
    combined = center_crop(shortcut, up)
    cat = jnp.concatenate([combined, center_crop(up, combined)], axis=1)
    return _ref_conv_layer(cat, params["post"], kernel_size=kernel_size,
                           stride=1, transpose=False)


# -----------------------------------------------------------------------------
# Deterministic parameter init (shapes follow the torch module)
# -----------------------------------------------------------------------------
def init_params(key, n_inputs, n_shortcut, n_outputs, kernel_size):
    def layer(k, cout, cin, transpose):
        k1, k2, k3, k4 = jax.random.split(k, 4)
        wshape = (cin, cout, kernel_size) if transpose else (cout, cin, kernel_size)
        w = 0.1 * jax.random.normal(k1, wshape, jnp.float32)
        b = 0.05 * jax.random.normal(k2, (cout,), jnp.float32)
        gamma = 1.0 + 0.1 * jax.random.normal(k3, (cout,), jnp.float32)
        beta = 0.05 * jax.random.normal(k4, (cout,), jnp.float32)
        return (w, b, gamma, beta)

    k1, k2, k3 = jax.random.split(key, 3)
    return {
        "upconv": layer(k1, n_inputs, n_inputs, transpose=True),
        "pre": layer(k2, n_outputs, n_inputs, transpose=False),
        "post": layer(k3, n_outputs, n_outputs + n_shortcut, transpose=False),
    }


if __name__ == "__main__":
    B = 2
    n_inputs, n_shortcut, n_outputs = 8, 8, 8
    kernel_size, stride = 5, 2
    L_in = 16
    L_short = 37   # upconv out 35, pre out 31, crop diff 3, post out 27

    key = jax.random.PRNGKey(0)
    kx, ks, kp = jax.random.split(key, 3)
    x = jax.random.normal(kx, (B, n_inputs, L_in), jnp.float32)
    shortcut = jax.random.normal(ks, (B, n_shortcut, L_short), jnp.float32)
    params = init_params(kp, n_inputs, n_shortcut, n_outputs, kernel_size)

    # Make the test data bf16-representable so the f32 reference isolates the
    # kernel's math (the kernel path feeds the MXU in bf16 by design).
    rnd = lambda t: jnp.asarray(t, jnp.bfloat16).astype(jnp.float32)
    x, shortcut = rnd(x), rnd(shortcut)
    params = jax.tree_util.tree_map(rnd, params)

    fwd = jax.jit(functools.partial(upsampling_block_forward,
                                    kernel_size=kernel_size, stride=stride,
                                    tile_l=256))
    out = jax.block_until_ready(fwd(x, shortcut, params))

    ref = jax.block_until_ready(_ref_upsampling_block(
        x, shortcut, params, kernel_size=kernel_size, stride=stride))

    assert out.shape == (B, n_outputs, 27), out.shape
    out_np, ref_np = np.asarray(out), np.asarray(ref)
    # bf16 matmuls + bf16 inter-layer storage vs a pure f32 reference.
    np.testing.assert_allclose(out_np, ref_np, rtol=8e-2, atol=8e-2)
    assert float(np.mean(np.abs(out_np - ref_np))) < 2e-2
    print("KERNEL_OK")
</pallas_src>

<mosaic_0001>
module attributes {stable_mosaic.version = 11 : i64} {
  func.func @_conv_stats_kernel(%arg0: i32, %arg1: i32, %arg2: memref<1x8x256xbf16, #tpu.memory_space<vmem>>, %arg3: memref<1x8x128xbf16, #tpu.memory_space<vmem>>, %arg4: memref<5x8x8xbf16, #tpu.memory_space<vmem>>, %arg5: memref<8x1xf32, #tpu.memory_space<vmem>>, %arg6: memref<1x8x256xbf16, #tpu.memory_space<vmem>>, %arg7: memref<1x2x8x1xf32, #tpu.memory_space<vmem>>) attributes {dimension_semantics = [#tpu.dimension_semantics<parallel>, #tpu.dimension_semantics<arbitrary>], iteration_bounds = array<i64: 2, 3>, scalar_prefetch = 0 : i64, scratch_operands = 0 : i64, tpu.core_type = #tpu.core_type<tc>, window_params = [{transform_indices = @transform_0, window_bounds = array<i64: 1, 8, 256>}, {transform_indices = @transform_1, window_bounds = array<i64: 1, 8, 128>}, {pipeline_mode = #tpu.pipeline_mode<synchronous>, transform_indices = @transform_2, window_bounds = array<i64: 5, 8, 8>}, {pipeline_mode = #tpu.pipeline_mode<synchronous>, transform_indices = @transform_3, window_bounds = array<i64: 8, 1>}, {transform_indices = @transform_4, window_bounds = array<i64: 1, 8, 256>}, {transform_indices = @transform_5, window_bounds = array<i64: 1, 2, 8, 1>}]} {
    %cst = arith.constant 0.000000e+00 : f32
    %0 = vector.broadcast %cst : f32 to vector<8x256xf32>
    %c0 = arith.constant 0 : index
    %c0_0 = arith.constant 0 : index
    %c0_1 = arith.constant 0 : index
    %1 = vector.load %arg2[%c0, %c0_0, %c0_1] : memref<1x8x256xbf16, #tpu.memory_space<vmem>>, vector<1x8x256xbf16>
    %2 = vector.shape_cast %1 : vector<1x8x256xbf16> to vector<8x256xbf16>
    %c0_2 = arith.constant 0 : index
    %c0_3 = arith.constant 0 : index
    %c0_4 = arith.constant 0 : index
    %3 = vector.load %arg3[%c0_2, %c0_3, %c0_4] : memref<1x8x128xbf16, #tpu.memory_space<vmem>>, vector<1x8x128xbf16>
    %4 = vector.shape_cast %3 : vector<1x8x128xbf16> to vector<8x128xbf16>
    %5 = tpu.concatenate %2, %4 in 1 : vector<8x256xbf16>, vector<8x128xbf16> -> vector<8x384xbf16>
    %c0_5 = arith.constant 0 : index
    %c0_6 = arith.constant 0 : index
    %c0_7 = arith.constant 0 : index
    %6 = vector.load %arg4[%c0_5, %c0_6, %c0_7] : memref<5x8x8xbf16, #tpu.memory_space<vmem>>, vector<1x8x8xbf16>
    %7 = vector.shape_cast %6 : vector<1x8x8xbf16> to vector<8x8xbf16>
    %8 = vector.extract_strided_slice %5 {offsets = [0, 0], sizes = [8, 256], strides = [1, 1]} : vector<8x384xbf16> to vector<8x256xbf16>
    %cst_8 = arith.constant dense<0.000000e+00> : vector<8x256xf32>
    %9 = tpu.matmul %7, %8, %cst_8 {dimension_numbers = #tpu.dot_dimension_numbers<[1], [0], [0], [1], [0, 0, 1, 1], [], []>} : vector<8x8xbf16>, vector<8x256xbf16>, vector<8x256xf32> -> vector<8x256xf32>
    %10 = arith.addf %0, %9 : vector<8x256xf32>
    %c1 = arith.constant 1 : index
    %c0_9 = arith.constant 0 : index
    %c0_10 = arith.constant 0 : index
    %11 = vector.load %arg4[%c1, %c0_9, %c0_10] : memref<5x8x8xbf16, #tpu.memory_space<vmem>>, vector<1x8x8xbf16>
    %12 = vector.shape_cast %11 : vector<1x8x8xbf16> to vector<8x8xbf16>
    %13 = vector.extract_strided_slice %5 {offsets = [0, 1], sizes = [8, 256], strides = [1, 1]} : vector<8x384xbf16> to vector<8x256xbf16>
    %cst_11 = arith.constant dense<0.000000e+00> : vector<8x256xf32>
    %14 = tpu.matmul %12, %13, %cst_11 {dimension_numbers = #tpu.dot_dimension_numbers<[1], [0], [0], [1], [0, 0, 1, 1], [], []>} : vector<8x8xbf16>, vector<8x256xbf16>, vector<8x256xf32> -> vector<8x256xf32>
    %15 = arith.addf %10, %14 : vector<8x256xf32>
    %c2 = arith.constant 2 : index
    %c0_12 = arith.constant 0 : index
    %c0_13 = arith.constant 0 : index
    %16 = vector.load %arg4[%c2, %c0_12, %c0_13] : memref<5x8x8xbf16, #tpu.memory_space<vmem>>, vector<1x8x8xbf16>
    %17 = vector.shape_cast %16 : vector<1x8x8xbf16> to vector<8x8xbf16>
    %18 = vector.extract_strided_slice %5 {offsets = [0, 2], sizes = [8, 256], strides = [1, 1]} : vector<8x384xbf16> to vector<8x256xbf16>
    %cst_14 = arith.constant dense<0.000000e+00> : vector<8x256xf32>
    %19 = tpu.matmul %17, %18, %cst_14 {dimension_numbers = #tpu.dot_dimension_numbers<[1], [0], [0], [1], [0, 0, 1, 1], [], []>} : vector<8x8xbf16>, vector<8x256xbf16>, vector<8x256xf32> -> vector<8x256xf32>
    %20 = arith.addf %15, %19 : vector<8x256xf32>
    %c3 = arith.constant 3 : index
    %c0_15 = arith.constant 0 : index
    %c0_16 = arith.constant 0 : index
    %21 = vector.load %arg4[%c3, %c0_15, %c0_16] : memref<5x8x8xbf16, #tpu.memory_space<vmem>>, vector<1x8x8xbf16>
    %22 = vector.shape_cast %21 : vector<1x8x8xbf16> to vector<8x8xbf16>
    %23 = vector.extract_strided_slice %5 {offsets = [0, 3], sizes = [8, 256], strides = [1, 1]} : vector<8x384xbf16> to vector<8x256xbf16>
    %cst_17 = arith.constant dense<0.000000e+00> : vector<8x256xf32>
    %24 = tpu.matmul %22, %23, %cst_17 {dimension_numbers = #tpu.dot_dimension_numbers<[1], [0], [0], [1], [0, 0, 1, 1], [], []>} : vector<8x8xbf16>, vector<8x256xbf16>, vector<8x256xf32> -> vector<8x256xf32>
    %25 = arith.addf %20, %24 : vector<8x256xf32>
    %c4 = arith.constant 4 : index
    %c0_18 = arith.constant 0 : index
    %c0_19 = arith.constant 0 : index
    %26 = vector.load %arg4[%c4, %c0_18, %c0_19] : memref<5x8x8xbf16, #tpu.memory_space<vmem>>, vector<1x8x8xbf16>
    %27 = vector.shape_cast %26 : vector<1x8x8xbf16> to vector<8x8xbf16>
    %28 = vector.extract_strided_slice %5 {offsets = [0, 4], sizes = [8, 256], strides = [1, 1]} : vector<8x384xbf16> to vector<8x256xbf16>
    %cst_20 = arith.constant dense<0.000000e+00> : vector<8x256xf32>
    %29 = tpu.matmul %27, %28, %cst_20 {dimension_numbers = #tpu.dot_dimension_numbers<[1], [0], [0], [1], [0, 0, 1, 1], [], []>} : vector<8x8xbf16>, vector<8x256xbf16>, vector<8x256xf32> -> vector<8x256xf32>
    %30 = arith.addf %25, %29 : vector<8x256xf32>
    %c0_21 = arith.constant 0 : index
    %c0_22 = arith.constant 0 : index
    %31 = vector.load %arg5[%c0_21, %c0_22] : memref<8x1xf32, #tpu.memory_space<vmem>>, vector<8x1xf32>
    %32 = vector.broadcast %31 : vector<8x1xf32> to vector<8x256xf32>
    %33 = arith.addf %30, %32 : vector<8x256xf32>
    %c0_i32 = arith.constant 0 : i32
    %34 = arith.cmpi eq, %arg1, %c0_i32 : i32
    %35 = arith.extui %34 : i1 to i32
    %c0_i32_23 = arith.constant 0 : i32
    %36 = arith.cmpi ne, %35, %c0_i32_23 : i32
    scf.if %36 {
      %cst_31 = arith.constant 0.000000e+00 : f32
      %47 = vector.broadcast %cst_31 : f32 to vector<1x2x8x1xf32>
      %c0_32 = arith.constant 0 : index
      %c0_33 = arith.constant 0 : index
      %c0_34 = arith.constant 0 : index
      %c0_35 = arith.constant 0 : index
      %48 = vector.load %arg7[%c0_32, %c0_33, %c0_34, %c0_35] : memref<1x2x8x1xf32, #tpu.memory_space<vmem>>, vector<1x2x8x1xf32>
      tpu.vector_store %arg7[%c0_32, %c0_33, %c0_34, %c0_35], %47 {strides = array<i32>} : memref<1x2x8x1xf32, #tpu.memory_space<vmem>>, vector<1x2x8x1xf32>,
    } else {
    }
    %c0_i32_24 = arith.constant 0 : i32
    %37 = arith.cmpi slt, %arg1, %c0_i32_24 : i32
    %38 = arith.extui %37 : i1 to i32
    %c0_i32_25 = arith.constant 0 : i32
    %39 = arith.cmpi ne, %38, %c0_i32_25 : i32
    scf.if %39 {
      %c0_31 = arith.constant 0 : index
      %c0_32 = arith.constant 0 : index
      %c0_33 = arith.constant 0 : index
      %c0_34 = arith.constant 0 : index
      %47 = vector.load %arg7[%c0_31, %c0_32, %c0_33, %c0_34] : memref<1x2x8x1xf32, #tpu.memory_space<vmem>>, vector<1x1x8x1xf32>
      %48 = vector.shape_cast %47 : vector<1x1x8x1xf32> to vector<8x1xf32>
      %cst_35 = arith.constant dense<0.000000e+00> : vector<8xf32>
      %49 = vector.multi_reduction <add>, %33, %cst_35 [1] : vector<8x256xf32> to vector<8xf32>
      %50 = vector.shape_cast %49 : vector<8xf32> to vector<8x1xf32>
      %51 = arith.addf %48, %50 : vector<8x1xf32>
      %c0_36 = arith.constant 0 : index
      %c0_37 = arith.constant 0 : index
      %c0_38 = arith.constant 0 : index
      %c0_39 = arith.constant 0 : index
      %52 = vector.load %arg7[%c0_36, %c0_37, %c0_38, %c0_39] : memref<1x2x8x1xf32, #tpu.memory_space<vmem>>, vector<1x1x8x1xf32>
      %53 = vector.shape_cast %52 : vector<1x1x8x1xf32> to vector<8x1xf32>
      %54 = vector.shape_cast %51 : vector<8x1xf32> to vector<1x1x8x1xf32>
      tpu.vector_store %arg7[%c0_36, %c0_37, %c0_38, %c0_39], %54 {strides = array<i32>} : memref<1x2x8x1xf32, #tpu.memory_space<vmem>>, vector<1x1x8x1xf32>,
      %c0_40 = arith.constant 0 : index
      %c1_41 = arith.constant 1 : index
      %c0_42 = arith.constant 0 : index
      %c0_43 = arith.constant 0 : index
      %55 = vector.load %arg7[%c0_40, %c1_41, %c0_42, %c0_43] : memref<1x2x8x1xf32, #tpu.memory_space<vmem>>, vector<1x1x8x1xf32>
      %56 = vector.shape_cast %55 : vector<1x1x8x1xf32> to vector<8x1xf32>
      %57 = arith.mulf %33, %33 : vector<8x256xf32>
      %cst_44 = arith.constant dense<0.000000e+00> : vector<8xf32>
      %58 = vector.multi_reduction <add>, %57, %cst_44 [1] : vector<8x256xf32> to vector<8xf32>
      %59 = vector.shape_cast %58 : vector<8xf32> to vector<8x1xf32>
      %60 = arith.addf %56, %59 : vector<8x1xf32>
      %c0_45 = arith.constant 0 : index
      %c1_46 = arith.constant 1 : index
      %c0_47 = arith.constant 0 : index
      %c0_48 = arith.constant 0 : index
      %61 = vector.load %arg7[%c0_45, %c1_46, %c0_47, %c0_48] : memref<1x2x8x1xf32, #tpu.memory_space<vmem>>, vector<1x1x8x1xf32>
      %62 = vector.shape_cast %61 : vector<1x1x8x1xf32> to vector<8x1xf32>
      %63 = vector.shape_cast %60 : vector<8x1xf32> to vector<1x1x8x1xf32>
      tpu.vector_store %arg7[%c0_45, %c1_46, %c0_47, %c0_48], %63 {strides = array<i32>} : memref<1x2x8x1xf32, #tpu.memory_space<vmem>>, vector<1x1x8x1xf32>,
    } else {
    }
    %c0_i32_26 = arith.constant 0 : i32
    %40 = arith.cmpi sge, %arg1, %c0_i32_26 : i32
    %41 = arith.extui %40 : i1 to i32
    %c0_i32_27 = arith.constant 0 : i32
    %42 = arith.cmpi ne, %41, %c0_i32_27 : i32
    scf.if %42 {
      %47 = tpu.iota {dimensions = array<i32: 1>} : vector<1x256xi32>
      %c256_i32 = arith.constant 256 : i32
      %48 = arith.muli %arg1, %c256_i32 : i32
      %49 = vector.broadcast %48 : i32 to vector<1x256xi32>
      %50 = arith.addi %47, %49 : vector<1x256xi32>
      %c35_i32 = arith.constant 35 : i32
      %51 = vector.broadcast %c35_i32 : i32 to vector<1x256xi32>
      %52 = arith.cmpi slt, %50, %51 : vector<1x256xi32>
      %cst_31 = arith.constant 0.000000e+00 : f32
      %53 = vector.shape_cast %52 : vector<1x256xi1> to vector<1x256xi1>
      %54 = vector.broadcast %53 : vector<1x256xi1> to vector<8x256xi1>
      %55 = vector.broadcast %cst_31 : f32 to vector<8x256xf32>
      %56 = arith.select %54, %33, %55 : vector<8x256xi1>, vector<8x256xf32>
      %c0_32 = arith.constant 0 : index
      %c0_33 = arith.constant 0 : index
      %c0_34 = arith.constant 0 : index
      %c0_35 = arith.constant 0 : index
      %57 = vector.load %arg7[%c0_32, %c0_33, %c0_34, %c0_35] : memref<1x2x8x1xf32, #tpu.memory_space<vmem>>, vector<1x1x8x1xf32>
      %58 = vector.shape_cast %57 : vector<1x1x8x1xf32> to vector<8x1xf32>
      %cst_36 = arith.constant dense<0.000000e+00> : vector<8xf32>
      %59 = vector.multi_reduction <add>, %56, %cst_36 [1] : vector<8x256xf32> to vector<8xf32>
      %60 = vector.shape_cast %59 : vector<8xf32> to vector<8x1xf32>
      %61 = arith.addf %58, %60 : vector<8x1xf32>
      %c0_37 = arith.constant 0 : index
      %c0_38 = arith.constant 0 : index
      %c0_39 = arith.constant 0 : index
      %c0_40 = arith.constant 0 : index
      %62 = vector.load %arg7[%c0_37, %c0_38, %c0_39, %c0_40] : memref<1x2x8x1xf32, #tpu.memory_space<vmem>>, vector<1x1x8x1xf32>
      %63 = vector.shape_cast %62 : vector<1x1x8x1xf32> to vector<8x1xf32>
      %64 = vector.shape_cast %61 : vector<8x1xf32> to vector<1x1x8x1xf32>
      tpu.vector_store %arg7[%c0_37, %c0_38, %c0_39, %c0_40], %64 {strides = array<i32>} : memref<1x2x8x1xf32, #tpu.memory_space<vmem>>, vector<1x1x8x1xf32>,
      %c0_41 = arith.constant 0 : index
      %c1_42 = arith.constant 1 : index
      %c0_43 = arith.constant 0 : index
      %c0_44 = arith.constant 0 : index
      %65 = vector.load %arg7[%c0_41, %c1_42, %c0_43, %c0_44] : memref<1x2x8x1xf32, #tpu.memory_space<vmem>>, vector<1x1x8x1xf32>
      %66 = vector.shape_cast %65 : vector<1x1x8x1xf32> to vector<8x1xf32>
      %67 = arith.mulf %56, %56 : vector<8x256xf32>
      %cst_45 = arith.constant dense<0.000000e+00> : vector<8xf32>
      %68 = vector.multi_reduction <add>, %67, %cst_45 [1] : vector<8x256xf32> to vector<8xf32>
      %69 = vector.shape_cast %68 : vector<8xf32> to vector<8x1xf32>
      %70 = arith.addf %66, %69 : vector<8x1xf32>
      %c0_46 = arith.constant 0 : index
      %c1_47 = arith.constant 1 : index
      %c0_48 = arith.constant 0 : index
      %c0_49 = arith.constant 0 : index
      %71 = vector.load %arg7[%c0_46, %c1_47, %c0_48, %c0_49] : memref<1x2x8x1xf32, #tpu.memory_space<vmem>>, vector<1x1x8x1xf32>
      %72 = vector.shape_cast %71 : vector<1x1x8x1xf32> to vector<8x1xf32>
      %73 = vector.shape_cast %70 : vector<8x1xf32> to vector<1x1x8x1xf32>
      tpu.vector_store %arg7[%c0_46, %c1_47, %c0_48, %c0_49], %73 {strides = array<i32>} : memref<1x2x8x1xf32, #tpu.memory_space<vmem>>, vector<1x1x8x1xf32>,
    } else {
    }
    %43 = arith.truncf %33 : vector<8x256xf32> to vector<8x256xbf16>
    %c0_28 = arith.constant 0 : index
    %c0_29 = arith.constant 0 : index
    %c0_30 = arith.constant 0 : index
    %44 = vector.load %arg6[%c0_28, %c0_29, %c0_30] : memref<1x8x256xbf16, #tpu.memory_space<vmem>>, vector<1x8x256xbf16>
    %45 = vector.shape_cast %44 : vector<1x8x256xbf16> to vector<8x256xbf16>
    %46 = vector.shape_cast %43 : vector<8x256xbf16> to vector<1x8x256xbf16>
    tpu.vector_store %arg6[%c0_28, %c0_29, %c0_30], %46 {strides = array<i32>} : memref<1x8x256xbf16, #tpu.memory_space<vmem>>, vector<1x8x256xbf16>,
    return
  }
  func.func @transform_0(%arg0: i32, %arg1: i32) -> (i32, i32, i32) {
    %c0_i32 = arith.constant 0 : i32
    %c0_i32_0 = arith.constant 0 : i32
    return %arg0, %c0_i32, %arg1 : i32, i32, i32
  }
  func.func @transform_1(%arg0: i32, %arg1: i32) -> (i32, i32, i32) {
    %c1_i32 = arith.constant 1 : i32
    %0 = arith.addi %arg1, %c1_i32 : i32
    %c2_i32 = arith.constant 2 : i32
    %1 = arith.muli %0, %c2_i32 : i32
    %c0_i32 = arith.constant 0 : i32
    %c0_i32_0 = arith.constant 0 : i32
    return %arg0, %c0_i32, %1 : i32, i32, i32
  }
  func.func @transform_2(%arg0: i32, %arg1: i32) -> (i32, i32, i32) {
    %c0_i32 = arith.constant 0 : i32
    %c0_i32_0 = arith.constant 0 : i32
    %c0_i32_1 = arith.constant 0 : i32
    %c0_i32_2 = arith.constant 0 : i32
    return %c0_i32, %c0_i32_0, %c0_i32_1 : i32, i32, i32
  }
  func.func @transform_3(%arg0: i32, %arg1: i32) -> (i32, i32) {
    %c0_i32 = arith.constant 0 : i32
    %c0_i32_0 = arith.constant 0 : i32
    %c0_i32_1 = arith.constant 0 : i32
    return %c0_i32, %c0_i32_0 : i32, i32
  }
  func.func @transform_4(%arg0: i32, %arg1: i32) -> (i32, i32, i32) {
    %c0_i32 = arith.constant 0 : i32
    %c0_i32_0 = arith.constant 0 : i32
    return %arg0, %c0_i32, %arg1 : i32, i32, i32
  }
  func.func @transform_5(%arg0: i32, %arg1: i32) -> (i32, i32, i32, i32) {
    %c0_i32 = arith.constant 0 : i32
    %c0_i32_0 = arith.constant 0 : i32
    %c0_i32_1 = arith.constant 0 : i32
    %c0_i32_2 = arith.constant 0 : i32
    return %arg0, %c0_i32, %c0_i32_0, %c0_i32_1 : i32, i32, i32, i32
  }
}

module attributes {stable_mosaic.version = 11 : i64} {
  func.func @_conv_stats_kernel(%arg0: i32, %arg1: i32, %arg2: memref<1x8x256xbf16, #tpu.memory_space<vmem>>, %arg3: memref<1x8x128xbf16, #tpu.memory_space<vmem>>, %arg4: memref<1x2x8x1xf32, #tpu.memory_space<vmem>>, %arg5: memref<5x8x8xbf16, #tpu.memory_space<vmem>>, %arg6: memref<8x1xf32, #tpu.memory_space<vmem>>, %arg7: memref<1x8x256xbf16, #tpu.memory_space<vmem>>, %arg8: memref<1x2x8x1xf32, #tpu.memory_space<vmem>>) attributes {dimension_semantics = [#tpu.dimension_semantics<parallel>, #tpu.dimension_semantics<arbitrary>], iteration_bounds = array<i64: 2, 2>, scalar_prefetch = 0 : i64, scratch_operands = 0 : i64, tpu.core_type = #tpu.core_type<tc>, window_params = [{transform_indices = @transform_0, window_bounds = array<i64: 1, 8, 256>}, {transform_indices = @transform_1, window_bounds = array<i64: 1, 8, 128>}, {transform_indices = @transform_2, window_bounds = array<i64: 1, 2, 8, 1>}, {pipeline_mode = #tpu.pipeline_mode<synchronous>, transform_indices = @transform_3, window_bounds = array<i64: 5, 8, 8>}, {pipeline_mode = #tpu.pipeline_mode<synchronous>, transform_indices = @transform_4, window_bounds = array<i64: 8, 1>}, {transform_indices = @transform_5, window_bounds = array<i64: 1, 8, 256>}, {transform_indices = @transform_6, window_bounds = array<i64: 1, 2, 8, 1>}]} {
    %cst = arith.constant 0.000000e+00 : f32
    %0 = vector.broadcast %cst : f32 to vector<8x256xf32>
    %c0 = arith.constant 0 : index
    %c0_0 = arith.constant 0 : index
    %c0_1 = arith.constant 0 : index
    %1 = vector.load %arg2[%c0, %c0_0, %c0_1] : memref<1x8x256xbf16, #tpu.memory_space<vmem>>, vector<1x8x256xbf16>
    %2 = vector.shape_cast %1 : vector<1x8x256xbf16> to vector<8x256xbf16>
    %c0_2 = arith.constant 0 : index
    %c0_3 = arith.constant 0 : index
    %c0_4 = arith.constant 0 : index
    %3 = vector.load %arg3[%c0_2, %c0_3, %c0_4] : memref<1x8x128xbf16, #tpu.memory_space<vmem>>, vector<1x8x128xbf16>
    %4 = vector.shape_cast %3 : vector<1x8x128xbf16> to vector<8x128xbf16>
    %5 = tpu.concatenate %2, %4 in 1 : vector<8x256xbf16>, vector<8x128xbf16> -> vector<8x384xbf16>
    %c0_5 = arith.constant 0 : index
    %c0_6 = arith.constant 0 : index
    %c0_7 = arith.constant 0 : index
    %c0_8 = arith.constant 0 : index
    %6 = vector.load %arg4[%c0_5, %c0_6, %c0_7, %c0_8] : memref<1x2x8x1xf32, #tpu.memory_space<vmem>>, vector<1x2x8x1xf32>
    %7 = vector.shape_cast %6 : vector<1x2x8x1xf32> to vector<2x8x1xf32>
    %8 = arith.extf %5 : vector<8x384xbf16> to vector<8x384xf32>
    %9 = vector.extract_strided_slice %7 {offsets = [0, 0, 0], sizes = [1, 8, 1], strides = [1, 1, 1]} : vector<2x8x1xf32> to vector<1x8x1xf32>
    %10 = vector.shape_cast %9 : vector<1x8x1xf32> to vector<8x1xf32>
    %11 = vector.broadcast %10 : vector<8x1xf32> to vector<8x384xf32>
    %12 = arith.mulf %8, %11 : vector<8x384xf32>
    %13 = vector.extract_strided_slice %7 {offsets = [1, 0, 0], sizes = [1, 8, 1], strides = [1, 1, 1]} : vector<2x8x1xf32> to vector<1x8x1xf32>
    %14 = vector.shape_cast %13 : vector<1x8x1xf32> to vector<8x1xf32>
    %15 = vector.broadcast %14 : vector<8x1xf32> to vector<8x384xf32>
    %16 = arith.addf %12, %15 : vector<8x384xf32>
    %cst_9 = arith.constant 0.000000e+00 : f32
    %17 = vector.broadcast %cst_9 : f32 to vector<8x384xf32>
    %18 = arith.maximumf %16, %17 : vector<8x384xf32>
    %19 = arith.truncf %18 : vector<8x384xf32> to vector<8x384xbf16>
    %c0_10 = arith.constant 0 : index
    %c0_11 = arith.constant 0 : index
    %c0_12 = arith.constant 0 : index
    %20 = vector.load %arg5[%c0_10, %c0_11, %c0_12] : memref<5x8x8xbf16, #tpu.memory_space<vmem>>, vector<1x8x8xbf16>
    %21 = vector.shape_cast %20 : vector<1x8x8xbf16> to vector<8x8xbf16>
    %22 = vector.extract_strided_slice %19 {offsets = [0, 0], sizes = [8, 256], strides = [1, 1]} : vector<8x384xbf16> to vector<8x256xbf16>
    %cst_13 = arith.constant dense<0.000000e+00> : vector<8x256xf32>
    %23 = tpu.matmul %21, %22, %cst_13 {dimension_numbers = #tpu.dot_dimension_numbers<[1], [0], [0], [1], [0, 0, 1, 1], [], []>} : vector<8x8xbf16>, vector<8x256xbf16>, vector<8x256xf32> -> vector<8x256xf32>
    %24 = arith.addf %0, %23 : vector<8x256xf32>
    %c1 = arith.constant 1 : index
    %c0_14 = arith.constant 0 : index
    %c0_15 = arith.constant 0 : index
    %25 = vector.load %arg5[%c1, %c0_14, %c0_15] : memref<5x8x8xbf16, #tpu.memory_space<vmem>>, vector<1x8x8xbf16>
    %26 = vector.shape_cast %25 : vector<1x8x8xbf16> to vector<8x8xbf16>
    %27 = vector.extract_strided_slice %19 {offsets = [0, 1], sizes = [8, 256], strides = [1, 1]} : vector<8x384xbf16> to vector<8x256xbf16>
    %cst_16 = arith.constant dense<0.000000e+00> : vector<8x256xf32>
    %28 = tpu.matmul %26, %27, %cst_16 {dimension_numbers = #tpu.dot_dimension_numbers<[1], [0], [0], [1], [0, 0, 1, 1], [], []>} : vector<8x8xbf16>, vector<8x256xbf16>, vector<8x256xf32> -> vector<8x256xf32>
    %29 = arith.addf %24, %28 : vector<8x256xf32>
    %c2 = arith.constant 2 : index
    %c0_17 = arith.constant 0 : index
    %c0_18 = arith.constant 0 : index
    %30 = vector.load %arg5[%c2, %c0_17, %c0_18] : memref<5x8x8xbf16, #tpu.memory_space<vmem>>, vector<1x8x8xbf16>
    %31 = vector.shape_cast %30 : vector<1x8x8xbf16> to vector<8x8xbf16>
    %32 = vector.extract_strided_slice %19 {offsets = [0, 2], sizes = [8, 256], strides = [1, 1]} : vector<8x384xbf16> to vector<8x256xbf16>
    %cst_19 = arith.constant dense<0.000000e+00> : vector<8x256xf32>
    %33 = tpu.matmul %31, %32, %cst_19 {dimension_numbers = #tpu.dot_dimension_numbers<[1], [0], [0], [1], [0, 0, 1, 1], [], []>} : vector<8x8xbf16>, vector<8x256xbf16>, vector<8x256xf32> -> vector<8x256xf32>
    %34 = arith.addf %29, %33 : vector<8x256xf32>
    %c3 = arith.constant 3 : index
    %c0_20 = arith.constant 0 : index
    %c0_21 = arith.constant 0 : index
    %35 = vector.load %arg5[%c3, %c0_20, %c0_21] : memref<5x8x8xbf16, #tpu.memory_space<vmem>>, vector<1x8x8xbf16>
    %36 = vector.shape_cast %35 : vector<1x8x8xbf16> to vector<8x8xbf16>
    %37 = vector.extract_strided_slice %19 {offsets = [0, 3], sizes = [8, 256], strides = [1, 1]} : vector<8x384xbf16> to vector<8x256xbf16>
    %cst_22 = arith.constant dense<0.000000e+00> : vector<8x256xf32>
    %38 = tpu.matmul %36, %37, %cst_22 {dimension_numbers = #tpu.dot_dimension_numbers<[1], [0], [0], [1], [0, 0, 1, 1], [], []>} : vector<8x8xbf16>, vector<8x256xbf16>, vector<8x256xf32> -> vector<8x256xf32>
    %39 = arith.addf %34, %38 : vector<8x256xf32>
    %c4 = arith.constant 4 : index
    %c0_23 = arith.constant 0 : index
    %c0_24 = arith.constant 0 : index
    %40 = vector.load %arg5[%c4, %c0_23, %c0_24] : memref<5x8x8xbf16, #tpu.memory_space<vmem>>, vector<1x8x8xbf16>
    %41 = vector.shape_cast %40 : vector<1x8x8xbf16> to vector<8x8xbf16>
    %42 = vector.extract_strided_slice %19 {offsets = [0, 4], sizes = [8, 256], strides = [1, 1]} : vector<8x384xbf16> to vector<8x256xbf16>
    %cst_25 = arith.constant dense<0.000000e+00> : vector<8x256xf32>
    %43 = tpu.matmul %41, %42, %cst_25 {dimension_numbers = #tpu.dot_dimension_numbers<[1], [0], [0], [1], [0, 0, 1, 1], [], []>} : vector<8x8xbf16>, vector<8x256xbf16>, vector<8x256xf32> -> vector<8x256xf32>
    %44 = arith.addf %39, %43 : vector<8x256xf32>
    %c0_26 = arith.constant 0 : index
    %c0_27 = arith.constant 0 : index
    %45 = vector.load %arg6[%c0_26, %c0_27] : memref<8x1xf32, #tpu.memory_space<vmem>>, vector<8x1xf32>
    %46 = vector.broadcast %45 : vector<8x1xf32> to vector<8x256xf32>
    %47 = arith.addf %44, %46 : vector<8x256xf32>
    %c0_i32 = arith.constant 0 : i32
    %48 = arith.cmpi eq, %arg1, %c0_i32 : i32
    %49 = arith.extui %48 : i1 to i32
    %c0_i32_28 = arith.constant 0 : i32
    %50 = arith.cmpi ne, %49, %c0_i32_28 : i32
    scf.if %50 {
      %cst_36 = arith.constant 0.000000e+00 : f32
      %61 = vector.broadcast %cst_36 : f32 to vector<1x2x8x1xf32>
      %c0_37 = arith.constant 0 : index
      %c0_38 = arith.constant 0 : index
      %c0_39 = arith.constant 0 : index
      %c0_40 = arith.constant 0 : index
      %62 = vector.load %arg8[%c0_37, %c0_38, %c0_39, %c0_40] : memref<1x2x8x1xf32, #tpu.memory_space<vmem>>, vector<1x2x8x1xf32>
      tpu.vector_store %arg8[%c0_37, %c0_38, %c0_39, %c0_40], %61 {strides = array<i32>} : memref<1x2x8x1xf32, #tpu.memory_space<vmem>>, vector<1x2x8x1xf32>,
    } else {
    }
    %c0_i32_29 = arith.constant 0 : i32
    %51 = arith.cmpi slt, %arg1, %c0_i32_29 : i32
    %52 = arith.extui %51 : i1 to i32
    %c0_i32_30 = arith.constant 0 : i32
    %53 = arith.cmpi ne, %52, %c0_i32_30 : i32
    scf.if %53 {
      %c0_36 = arith.constant 0 : index
      %c0_37 = arith.constant 0 : index
      %c0_38 = arith.constant 0 : index
      %c0_39 = arith.constant 0 : index
      %61 = vector.load %arg8[%c0_36, %c0_37, %c0_38, %c0_39] : memref<1x2x8x1xf32, #tpu.memory_space<vmem>>, vector<1x1x8x1xf32>
      %62 = vector.shape_cast %61 : vector<1x1x8x1xf32> to vector<8x1xf32>
      %cst_40 = arith.constant dense<0.000000e+00> : vector<8xf32>
      %63 = vector.multi_reduction <add>, %47, %cst_40 [1] : vector<8x256xf32> to vector<8xf32>
      %64 = vector.shape_cast %63 : vector<8xf32> to vector<8x1xf32>
      %65 = arith.addf %62, %64 : vector<8x1xf32>
      %c0_41 = arith.constant 0 : index
      %c0_42 = arith.constant 0 : index
      %c0_43 = arith.constant 0 : index
      %c0_44 = arith.constant 0 : index
      %66 = vector.load %arg8[%c0_41, %c0_42, %c0_43, %c0_44] : memref<1x2x8x1xf32, #tpu.memory_space<vmem>>, vector<1x1x8x1xf32>
      %67 = vector.shape_cast %66 : vector<1x1x8x1xf32> to vector<8x1xf32>
      %68 = vector.shape_cast %65 : vector<8x1xf32> to vector<1x1x8x1xf32>
      tpu.vector_store %arg8[%c0_41, %c0_42, %c0_43, %c0_44], %68 {strides = array<i32>} : memref<1x2x8x1xf32, #tpu.memory_space<vmem>>, vector<1x1x8x1xf32>,
      %c0_45 = arith.constant 0 : index
      %c1_46 = arith.constant 1 : index
      %c0_47 = arith.constant 0 : index
      %c0_48 = arith.constant 0 : index
      %69 = vector.load %arg8[%c0_45, %c1_46, %c0_47, %c0_48] : memref<1x2x8x1xf32, #tpu.memory_space<vmem>>, vector<1x1x8x1xf32>
      %70 = vector.shape_cast %69 : vector<1x1x8x1xf32> to vector<8x1xf32>
      %71 = arith.mulf %47, %47 : vector<8x256xf32>
      %cst_49 = arith.constant dense<0.000000e+00> : vector<8xf32>
      %72 = vector.multi_reduction <add>, %71, %cst_49 [1] : vector<8x256xf32> to vector<8xf32>
      %73 = vector.shape_cast %72 : vector<8xf32> to vector<8x1xf32>
      %74 = arith.addf %70, %73 : vector<8x1xf32>
      %c0_50 = arith.constant 0 : index
      %c1_51 = arith.constant 1 : index
      %c0_52 = arith.constant 0 : index
      %c0_53 = arith.constant 0 : index
      %75 = vector.load %arg8[%c0_50, %c1_51, %c0_52, %c0_53] : memref<1x2x8x1xf32, #tpu.memory_space<vmem>>, vector<1x1x8x1xf32>
      %76 = vector.shape_cast %75 : vector<1x1x8x1xf32> to vector<8x1xf32>
      %77 = vector.shape_cast %74 : vector<8x1xf32> to vector<1x1x8x1xf32>
      tpu.vector_store %arg8[%c0_50, %c1_51, %c0_52, %c0_53], %77 {strides = array<i32>} : memref<1x2x8x1xf32, #tpu.memory_space<vmem>>, vector<1x1x8x1xf32>,
    } else {
    }
    %c0_i32_31 = arith.constant 0 : i32
    %54 = arith.cmpi sge, %arg1, %c0_i32_31 : i32
    %55 = arith.extui %54 : i1 to i32
    %c0_i32_32 = arith.constant 0 : i32
    %56 = arith.cmpi ne, %55, %c0_i32_32 : i32
    scf.if %56 {
      %61 = tpu.iota {dimensions = array<i32: 1>} : vector<1x256xi32>
      %c256_i32 = arith.constant 256 : i32
      %62 = arith.muli %arg1, %c256_i32 : i32
      %63 = vector.broadcast %62 : i32 to vector<1x256xi32>
      %64 = arith.addi %61, %63 : vector<1x256xi32>
      %c31_i32 = arith.constant 31 : i32
      %65 = vector.broadcast %c31_i32 : i32 to vector<1x256xi32>
      %66 = arith.cmpi slt, %64, %65 : vector<1x256xi32>
      %cst_36 = arith.constant 0.000000e+00 : f32
      %67 = vector.shape_cast %66 : vector<1x256xi1> to vector<1x256xi1>
      %68 = vector.broadcast %67 : vector<1x256xi1> to vector<8x256xi1>
      %69 = vector.broadcast %cst_36 : f32 to vector<8x256xf32>
      %70 = arith.select %68, %47, %69 : vector<8x256xi1>, vector<8x256xf32>
      %c0_37 = arith.constant 0 : index
      %c0_38 = arith.constant 0 : index
      %c0_39 = arith.constant 0 : index
      %c0_40 = arith.constant 0 : index
      %71 = vector.load %arg8[%c0_37, %c0_38, %c0_39, %c0_40] : memref<1x2x8x1xf32, #tpu.memory_space<vmem>>, vector<1x1x8x1xf32>
      %72 = vector.shape_cast %71 : vector<1x1x8x1xf32> to vector<8x1xf32>
      %cst_41 = arith.constant dense<0.000000e+00> : vector<8xf32>
      %73 = vector.multi_reduction <add>, %70, %cst_41 [1] : vector<8x256xf32> to vector<8xf32>
      %74 = vector.shape_cast %73 : vector<8xf32> to vector<8x1xf32>
      %75 = arith.addf %72, %74 : vector<8x1xf32>
      %c0_42 = arith.constant 0 : index
      %c0_43 = arith.constant 0 : index
      %c0_44 = arith.constant 0 : index
      %c0_45 = arith.constant 0 : index
      %76 = vector.load %arg8[%c0_42, %c0_43, %c0_44, %c0_45] : memref<1x2x8x1xf32, #tpu.memory_space<vmem>>, vector<1x1x8x1xf32>
      %77 = vector.shape_cast %76 : vector<1x1x8x1xf32> to vector<8x1xf32>
      %78 = vector.shape_cast %75 : vector<8x1xf32> to vector<1x1x8x1xf32>
      tpu.vector_store %arg8[%c0_42, %c0_43, %c0_44, %c0_45], %78 {strides = array<i32>} : memref<1x2x8x1xf32, #tpu.memory_space<vmem>>, vector<1x1x8x1xf32>,
      %c0_46 = arith.constant 0 : index
      %c1_47 = arith.constant 1 : index
      %c0_48 = arith.constant 0 : index
      %c0_49 = arith.constant 0 : index
      %79 = vector.load %arg8[%c0_46, %c1_47, %c0_48, %c0_49] : memref<1x2x8x1xf32, #tpu.memory_space<vmem>>, vector<1x1x8x1xf32>
      %80 = vector.shape_cast %79 : vector<1x1x8x1xf32> to vector<8x1xf32>
      %81 = arith.mulf %70, %70 : vector<8x256xf32>
      %cst_50 = arith.constant dense<0.000000e+00> : vector<8xf32>
      %82 = vector.multi_reduction <add>, %81, %cst_50 [1] : vector<8x256xf32> to vector<8xf32>
      %83 = vector.shape_cast %82 : vector<8xf32> to vector<8x1xf32>
      %84 = arith.addf %80, %83 : vector<8x1xf32>
      %c0_51 = arith.constant 0 : index
      %c1_52 = arith.constant 1 : index
      %c0_53 = arith.constant 0 : index
      %c0_54 = arith.constant 0 : index
      %85 = vector.load %arg8[%c0_51, %c1_52, %c0_53, %c0_54] : memref<1x2x8x1xf32, #tpu.memory_space<vmem>>, vector<1x1x8x1xf32>
      %86 = vector.shape_cast %85 : vector<1x1x8x1xf32> to vector<8x1xf32>
      %87 = vector.shape_cast %84 : vector<8x1xf32> to vector<1x1x8x1xf32>
      tpu.vector_store %arg8[%c0_51, %c1_52, %c0_53, %c0_54], %87 {strides = array<i32>} : memref<1x2x8x1xf32, #tpu.memory_space<vmem>>, vector<1x1x8x1xf32>,
    } else {
    }
    %57 = arith.truncf %47 : vector<8x256xf32> to vector<8x256xbf16>
    %c0_33 = arith.constant 0 : index
    %c0_34 = arith.constant 0 : index
    %c0_35 = arith.constant 0 : index
    %58 = vector.load %arg7[%c0_33, %c0_34, %c0_35] : memref<1x8x256xbf16, #tpu.memory_space<vmem>>, vector<1x8x256xbf16>
    %59 = vector.shape_cast %58 : vector<1x8x256xbf16> to vector<8x256xbf16>
    %60 = vector.shape_cast %57 : vector<8x256xbf16> to vector<1x8x256xbf16>
    tpu.vector_store %arg7[%c0_33, %c0_34, %c0_35], %60 {strides = array<i32>} : memref<1x8x256xbf16, #tpu.memory_space<vmem>>, vector<1x8x256xbf16>,
    return
  }
  func.func @transform_0(%arg0: i32, %arg1: i32) -> (i32, i32, i32) {
    %c0_i32 = arith.constant 0 : i32
    %c0_i32_0 = arith.constant 0 : i32
    return %arg0, %c0_i32, %arg1 : i32, i32, i32
  }
  func.func @transform_1(%arg0: i32, %arg1: i32) -> (i32, i32, i32) {
    %c1_i32 = arith.constant 1 : i32
    %0 = arith.addi %arg1, %c1_i32 : i32
    %c2_i32 = arith.constant 2 : i32
    %1 = arith.muli %0, %c2_i32 : i32
    %c0_i32 = arith.constant 0 : i32
    %c0_i32_0 = arith.constant 0 : i32
    return %arg0, %c0_i32, %1 : i32, i32, i32
  }
  func.func @transform_2(%arg0: i32, %arg1: i32) -> (i32, i32, i32, i32) {
    %c0_i32 = arith.constant 0 : i32
    %c0_i32_0 = arith.constant 0 : i32
    %c0_i32_1 = arith.constant 0 : i32
    %c0_i32_2 = arith.constant 0 : i32
    return %arg0, %c0_i32, %c0_i32_0, %c0_i32_1 : i32, i32, i32, i32
  }
  func.func @transform_3(%arg0: i32, %arg1: i32) -> (i32, i32, i32) {
    %c0_i32 = arith.constant 0 : i32
    %c0_i32_0 = arith.constant 0 : i32
    %c0_i32_1 = arith.constant 0 : i32
    %c0_i32_2 = arith.constant 0 : i32
    return %c0_i32, %c0_i32_0, %c0_i32_1 : i32, i32, i32
  }
  func.func @transform_4(%arg0: i32, %arg1: i32) -> (i32, i32) {
    %c0_i32 = arith.constant 0 : i32
    %c0_i32_0 = arith.constant 0 : i32
    %c0_i32_1 = arith.constant 0 : i32
    return %c0_i32, %c0_i32_0 : i32, i32
  }
  func.func @transform_5(%arg0: i32, %arg1: i32) -> (i32, i32, i32) {
    %c0_i32 = arith.constant 0 : i32
    %c0_i32_0 = arith.constant 0 : i32
    return %arg0, %c0_i32, %arg1 : i32, i32, i32
  }
  func.func @transform_6(%arg0: i32, %arg1: i32) -> (i32, i32, i32, i32) {
    %c0_i32 = arith.constant 0 : i32
    %c0_i32_0 = arith.constant 0 : i32
    %c0_i32_1 = arith.constant 0 : i32
    %c0_i32_2 = arith.constant 0 : i32
    return %arg0, %c0_i32, %c0_i32_0, %c0_i32_1 : i32, i32, i32, i32
  }
}

module attributes {stable_mosaic.version = 11 : i64} {
  func.func @_conv_stats_kernel(%arg0: i32, %arg1: i32, %arg2: memref<1x8x256xbf16, #tpu.memory_space<vmem>>, %arg3: memref<1x8x128xbf16, #tpu.memory_space<vmem>>, %arg4: memref<1x8x256xbf16, #tpu.memory_space<vmem>>, %arg5: memref<1x8x128xbf16, #tpu.memory_space<vmem>>, %arg6: memref<1x2x8x1xf32, #tpu.memory_space<vmem>>, %arg7: memref<5x8x8xbf16, #tpu.memory_space<vmem>>, %arg8: memref<5x8x8xbf16, #tpu.memory_space<vmem>>, %arg9: memref<8x1xf32, #tpu.memory_space<vmem>>, %arg10: memref<1x8x256xbf16, #tpu.memory_space<vmem>>, %arg11: memref<1x2x8x1xf32, #tpu.memory_space<vmem>>) attributes {dimension_semantics = [#tpu.dimension_semantics<parallel>, #tpu.dimension_semantics<arbitrary>], iteration_bounds = array<i64: 2, 1>, scalar_prefetch = 0 : i64, scratch_operands = 0 : i64, tpu.core_type = #tpu.core_type<tc>, window_params = [{transform_indices = @transform_0, window_bounds = array<i64: 1, 8, 256>}, {transform_indices = @transform_1, window_bounds = array<i64: 1, 8, 128>}, {transform_indices = @transform_2, window_bounds = array<i64: 1, 8, 256>}, {transform_indices = @transform_3, window_bounds = array<i64: 1, 8, 128>}, {transform_indices = @transform_4, window_bounds = array<i64: 1, 2, 8, 1>}, {pipeline_mode = #tpu.pipeline_mode<synchronous>, transform_indices = @transform_5, window_bounds = array<i64: 5, 8, 8>}, {pipeline_mode = #tpu.pipeline_mode<synchronous>, transform_indices = @transform_6, window_bounds = array<i64: 5, 8, 8>}, {pipeline_mode = #tpu.pipeline_mode<synchronous>, transform_indices = @transform_7, window_bounds = array<i64: 8, 1>}, {transform_indices = @transform_8, window_bounds = array<i64: 1, 8, 256>}, {transform_indices = @transform_9, window_bounds = array<i64: 1, 2, 8, 1>}]} {
    %cst = arith.constant 0.000000e+00 : f32
    %0 = vector.broadcast %cst : f32 to vector<8x256xf32>
    %c0 = arith.constant 0 : index
    %c0_0 = arith.constant 0 : index
    %c0_1 = arith.constant 0 : index
    %1 = vector.load %arg2[%c0, %c0_0, %c0_1] : memref<1x8x256xbf16, #tpu.memory_space<vmem>>, vector<1x8x256xbf16>
    %2 = vector.shape_cast %1 : vector<1x8x256xbf16> to vector<8x256xbf16>
    %c0_2 = arith.constant 0 : index
    %c0_3 = arith.constant 0 : index
    %c0_4 = arith.constant 0 : index
    %3 = vector.load %arg3[%c0_2, %c0_3, %c0_4] : memref<1x8x128xbf16, #tpu.memory_space<vmem>>, vector<1x8x128xbf16>
    %4 = vector.shape_cast %3 : vector<1x8x128xbf16> to vector<8x128xbf16>
    %5 = tpu.concatenate %2, %4 in 1 : vector<8x256xbf16>, vector<8x128xbf16> -> vector<8x384xbf16>
    %c0_5 = arith.constant 0 : index
    %c0_6 = arith.constant 0 : index
    %c0_7 = arith.constant 0 : index
    %6 = vector.load %arg7[%c0_5, %c0_6, %c0_7] : memref<5x8x8xbf16, #tpu.memory_space<vmem>>, vector<1x8x8xbf16>
    %7 = vector.shape_cast %6 : vector<1x8x8xbf16> to vector<8x8xbf16>
    %8 = vector.extract_strided_slice %5 {offsets = [0, 0], sizes = [8, 256], strides = [1, 1]} : vector<8x384xbf16> to vector<8x256xbf16>
    %cst_8 = arith.constant dense<0.000000e+00> : vector<8x256xf32>
    %9 = tpu.matmul %7, %8, %cst_8 {dimension_numbers = #tpu.dot_dimension_numbers<[1], [0], [0], [1], [0, 0, 1, 1], [], []>} : vector<8x8xbf16>, vector<8x256xbf16>, vector<8x256xf32> -> vector<8x256xf32>
    %10 = arith.addf %0, %9 : vector<8x256xf32>
    %c1 = arith.constant 1 : index
    %c0_9 = arith.constant 0 : index
    %c0_10 = arith.constant 0 : index
    %11 = vector.load %arg7[%c1, %c0_9, %c0_10] : memref<5x8x8xbf16, #tpu.memory_space<vmem>>, vector<1x8x8xbf16>
    %12 = vector.shape_cast %11 : vector<1x8x8xbf16> to vector<8x8xbf16>
    %13 = vector.extract_strided_slice %5 {offsets = [0, 1], sizes = [8, 256], strides = [1, 1]} : vector<8x384xbf16> to vector<8x256xbf16>
    %cst_11 = arith.constant dense<0.000000e+00> : vector<8x256xf32>
    %14 = tpu.matmul %12, %13, %cst_11 {dimension_numbers = #tpu.dot_dimension_numbers<[1], [0], [0], [1], [0, 0, 1, 1], [], []>} : vector<8x8xbf16>, vector<8x256xbf16>, vector<8x256xf32> -> vector<8x256xf32>
    %15 = arith.addf %10, %14 : vector<8x256xf32>
    %c2 = arith.constant 2 : index
    %c0_12 = arith.constant 0 : index
    %c0_13 = arith.constant 0 : index
    %16 = vector.load %arg7[%c2, %c0_12, %c0_13] : memref<5x8x8xbf16, #tpu.memory_space<vmem>>, vector<1x8x8xbf16>
    %17 = vector.shape_cast %16 : vector<1x8x8xbf16> to vector<8x8xbf16>
    %18 = vector.extract_strided_slice %5 {offsets = [0, 2], sizes = [8, 256], strides = [1, 1]} : vector<8x384xbf16> to vector<8x256xbf16>
    %cst_14 = arith.constant dense<0.000000e+00> : vector<8x256xf32>
    %19 = tpu.matmul %17, %18, %cst_14 {dimension_numbers = #tpu.dot_dimension_numbers<[1], [0], [0], [1], [0, 0, 1, 1], [], []>} : vector<8x8xbf16>, vector<8x256xbf16>, vector<8x256xf32> -> vector<8x256xf32>
    %20 = arith.addf %15, %19 : vector<8x256xf32>
    %c3 = arith.constant 3 : index
    %c0_15 = arith.constant 0 : index
    %c0_16 = arith.constant 0 : index
    %21 = vector.load %arg7[%c3, %c0_15, %c0_16] : memref<5x8x8xbf16, #tpu.memory_space<vmem>>, vector<1x8x8xbf16>
    %22 = vector.shape_cast %21 : vector<1x8x8xbf16> to vector<8x8xbf16>
    %23 = vector.extract_strided_slice %5 {offsets = [0, 3], sizes = [8, 256], strides = [1, 1]} : vector<8x384xbf16> to vector<8x256xbf16>
    %cst_17 = arith.constant dense<0.000000e+00> : vector<8x256xf32>
    %24 = tpu.matmul %22, %23, %cst_17 {dimension_numbers = #tpu.dot_dimension_numbers<[1], [0], [0], [1], [0, 0, 1, 1], [], []>} : vector<8x8xbf16>, vector<8x256xbf16>, vector<8x256xf32> -> vector<8x256xf32>
    %25 = arith.addf %20, %24 : vector<8x256xf32>
    %c4 = arith.constant 4 : index
    %c0_18 = arith.constant 0 : index
    %c0_19 = arith.constant 0 : index
    %26 = vector.load %arg7[%c4, %c0_18, %c0_19] : memref<5x8x8xbf16, #tpu.memory_space<vmem>>, vector<1x8x8xbf16>
    %27 = vector.shape_cast %26 : vector<1x8x8xbf16> to vector<8x8xbf16>
    %28 = vector.extract_strided_slice %5 {offsets = [0, 4], sizes = [8, 256], strides = [1, 1]} : vector<8x384xbf16> to vector<8x256xbf16>
    %cst_20 = arith.constant dense<0.000000e+00> : vector<8x256xf32>
    %29 = tpu.matmul %27, %28, %cst_20 {dimension_numbers = #tpu.dot_dimension_numbers<[1], [0], [0], [1], [0, 0, 1, 1], [], []>} : vector<8x8xbf16>, vector<8x256xbf16>, vector<8x256xf32> -> vector<8x256xf32>
    %30 = arith.addf %25, %29 : vector<8x256xf32>
    %c0_21 = arith.constant 0 : index
    %c0_22 = arith.constant 0 : index
    %c0_23 = arith.constant 0 : index
    %31 = vector.load %arg4[%c0_21, %c0_22, %c0_23] : memref<1x8x256xbf16, #tpu.memory_space<vmem>>, vector<1x8x256xbf16>
    %32 = vector.shape_cast %31 : vector<1x8x256xbf16> to vector<8x256xbf16>
    %c0_24 = arith.constant 0 : index
    %c0_25 = arith.constant 0 : index
    %c0_26 = arith.constant 0 : index
    %33 = vector.load %arg5[%c0_24, %c0_25, %c0_26] : memref<1x8x128xbf16, #tpu.memory_space<vmem>>, vector<1x8x128xbf16>
    %34 = vector.shape_cast %33 : vector<1x8x128xbf16> to vector<8x128xbf16>
    %35 = tpu.concatenate %32, %34 in 1 : vector<8x256xbf16>, vector<8x128xbf16> -> vector<8x384xbf16>
    %c0_27 = arith.constant 0 : index
    %c0_28 = arith.constant 0 : index
    %c0_29 = arith.constant 0 : index
    %c0_30 = arith.constant 0 : index
    %36 = vector.load %arg6[%c0_27, %c0_28, %c0_29, %c0_30] : memref<1x2x8x1xf32, #tpu.memory_space<vmem>>, vector<1x2x8x1xf32>
    %37 = vector.shape_cast %36 : vector<1x2x8x1xf32> to vector<2x8x1xf32>
    %38 = arith.extf %35 : vector<8x384xbf16> to vector<8x384xf32>
    %39 = vector.extract_strided_slice %37 {offsets = [0, 0, 0], sizes = [1, 8, 1], strides = [1, 1, 1]} : vector<2x8x1xf32> to vector<1x8x1xf32>
    %40 = vector.shape_cast %39 : vector<1x8x1xf32> to vector<8x1xf32>
    %41 = vector.broadcast %40 : vector<8x1xf32> to vector<8x384xf32>
    %42 = arith.mulf %38, %41 : vector<8x384xf32>
    %43 = vector.extract_strided_slice %37 {offsets = [1, 0, 0], sizes = [1, 8, 1], strides = [1, 1, 1]} : vector<2x8x1xf32> to vector<1x8x1xf32>
    %44 = vector.shape_cast %43 : vector<1x8x1xf32> to vector<8x1xf32>
    %45 = vector.broadcast %44 : vector<8x1xf32> to vector<8x384xf32>
    %46 = arith.addf %42, %45 : vector<8x384xf32>
    %cst_31 = arith.constant 0.000000e+00 : f32
    %47 = vector.broadcast %cst_31 : f32 to vector<8x384xf32>
    %48 = arith.maximumf %46, %47 : vector<8x384xf32>
    %49 = arith.truncf %48 : vector<8x384xf32> to vector<8x384xbf16>
    %c0_32 = arith.constant 0 : index
    %c0_33 = arith.constant 0 : index
    %c0_34 = arith.constant 0 : index
    %50 = vector.load %arg8[%c0_32, %c0_33, %c0_34] : memref<5x8x8xbf16, #tpu.memory_space<vmem>>, vector<1x8x8xbf16>
    %51 = vector.shape_cast %50 : vector<1x8x8xbf16> to vector<8x8xbf16>
    %52 = vector.extract_strided_slice %49 {offsets = [0, 0], sizes = [8, 256], strides = [1, 1]} : vector<8x384xbf16> to vector<8x256xbf16>
    %cst_35 = arith.constant dense<0.000000e+00> : vector<8x256xf32>
    %53 = tpu.matmul %51, %52, %cst_35 {dimension_numbers = #tpu.dot_dimension_numbers<[1], [0], [0], [1], [0, 0, 1, 1], [], []>} : vector<8x8xbf16>, vector<8x256xbf16>, vector<8x256xf32> -> vector<8x256xf32>
    %54 = arith.addf %30, %53 : vector<8x256xf32>
    %c1_36 = arith.constant 1 : index
    %c0_37 = arith.constant 0 : index
    %c0_38 = arith.constant 0 : index
    %55 = vector.load %arg8[%c1_36, %c0_37, %c0_38] : memref<5x8x8xbf16, #tpu.memory_space<vmem>>, vector<1x8x8xbf16>
    %56 = vector.shape_cast %55 : vector<1x8x8xbf16> to vector<8x8xbf16>
    %57 = vector.extract_strided_slice %49 {offsets = [0, 1], sizes = [8, 256], strides = [1, 1]} : vector<8x384xbf16> to vector<8x256xbf16>
    %cst_39 = arith.constant dense<0.000000e+00> : vector<8x256xf32>
    %58 = tpu.matmul %56, %57, %cst_39 {dimension_numbers = #tpu.dot_dimension_numbers<[1], [0], [0], [1], [0, 0, 1, 1], [], []>} : vector<8x8xbf16>, vector<8x256xbf16>, vector<8x256xf32> -> vector<8x256xf32>
    %59 = arith.addf %54, %58 : vector<8x256xf32>
    %c2_40 = arith.constant 2 : index
    %c0_41 = arith.constant 0 : index
    %c0_42 = arith.constant 0 : index
    %60 = vector.load %arg8[%c2_40, %c0_41, %c0_42] : memref<5x8x8xbf16, #tpu.memory_space<vmem>>, vector<1x8x8xbf16>
    %61 = vector.shape_cast %60 : vector<1x8x8xbf16> to vector<8x8xbf16>
    %62 = vector.extract_strided_slice %49 {offsets = [0, 2], sizes = [8, 256], strides = [1, 1]} : vector<8x384xbf16> to vector<8x256xbf16>
    %cst_43 = arith.constant dense<0.000000e+00> : vector<8x256xf32>
    %63 = tpu.matmul %61, %62, %cst_43 {dimension_numbers = #tpu.dot_dimension_numbers<[1], [0], [0], [1], [0, 0, 1, 1], [], []>} : vector<8x8xbf16>, vector<8x256xbf16>, vector<8x256xf32> -> vector<8x256xf32>
    %64 = arith.addf %59, %63 : vector<8x256xf32>
    %c3_44 = arith.constant 3 : index
    %c0_45 = arith.constant 0 : index
    %c0_46 = arith.constant 0 : index
    %65 = vector.load %arg8[%c3_44, %c0_45, %c0_46] : memref<5x8x8xbf16, #tpu.memory_space<vmem>>, vector<1x8x8xbf16>
    %66 = vector.shape_cast %65 : vector<1x8x8xbf16> to vector<8x8xbf16>
    %67 = vector.extract_strided_slice %49 {offsets = [0, 3], sizes = [8, 256], strides = [1, 1]} : vector<8x384xbf16> to vector<8x256xbf16>
    %cst_47 = arith.constant dense<0.000000e+00> : vector<8x256xf32>
    %68 = tpu.matmul %66, %67, %cst_47 {dimension_numbers = #tpu.dot_dimension_numbers<[1], [0], [0], [1], [0, 0, 1, 1], [], []>} : vector<8x8xbf16>, vector<8x256xbf16>, vector<8x256xf32> -> vector<8x256xf32>
    %69 = arith.addf %64, %68 : vector<8x256xf32>
    %c4_48 = arith.constant 4 : index
    %c0_49 = arith.constant 0 : index
    %c0_50 = arith.constant 0 : index
    %70 = vector.load %arg8[%c4_48, %c0_49, %c0_50] : memref<5x8x8xbf16, #tpu.memory_space<vmem>>, vector<1x8x8xbf16>
    %71 = vector.shape_cast %70 : vector<1x8x8xbf16> to vector<8x8xbf16>
    %72 = vector.extract_strided_slice %49 {offsets = [0, 4], sizes = [8, 256], strides = [1, 1]} : vector<8x384xbf16> to vector<8x256xbf16>
    %cst_51 = arith.constant dense<0.000000e+00> : vector<8x256xf32>
    %73 = tpu.matmul %71, %72, %cst_51 {dimension_numbers = #tpu.dot_dimension_numbers<[1], [0], [0], [1], [0, 0, 1, 1], [], []>} : vector<8x8xbf16>, vector<8x256xbf16>, vector<8x256xf32> -> vector<8x256xf32>
    %74 = arith.addf %69, %73 : vector<8x256xf32>
    %c0_52 = arith.constant 0 : index
    %c0_53 = arith.constant 0 : index
    %75 = vector.load %arg9[%c0_52, %c0_53] : memref<8x1xf32, #tpu.memory_space<vmem>>, vector<8x1xf32>
    %76 = vector.broadcast %75 : vector<8x1xf32> to vector<8x256xf32>
    %77 = arith.addf %74, %76 : vector<8x256xf32>
    %c0_i32 = arith.constant 0 : i32
    %78 = arith.cmpi eq, %arg1, %c0_i32 : i32
    %79 = arith.extui %78 : i1 to i32
    %c0_i32_54 = arith.constant 0 : i32
    %80 = arith.cmpi ne, %79, %c0_i32_54 : i32
    scf.if %80 {
      %cst_62 = arith.constant 0.000000e+00 : f32
      %91 = vector.broadcast %cst_62 : f32 to vector<1x2x8x1xf32>
      %c0_63 = arith.constant 0 : index
      %c0_64 = arith.constant 0 : index
      %c0_65 = arith.constant 0 : index
      %c0_66 = arith.constant 0 : index
      %92 = vector.load %arg11[%c0_63, %c0_64, %c0_65, %c0_66] : memref<1x2x8x1xf32, #tpu.memory_space<vmem>>, vector<1x2x8x1xf32>
      tpu.vector_store %arg11[%c0_63, %c0_64, %c0_65, %c0_66], %91 {strides = array<i32>} : memref<1x2x8x1xf32, #tpu.memory_space<vmem>>, vector<1x2x8x1xf32>,
    } else {
    }
    %c0_i32_55 = arith.constant 0 : i32
    %81 = arith.cmpi slt, %arg1, %c0_i32_55 : i32
    %82 = arith.extui %81 : i1 to i32
    %c0_i32_56 = arith.constant 0 : i32
    %83 = arith.cmpi ne, %82, %c0_i32_56 : i32
    scf.if %83 {
      %c0_62 = arith.constant 0 : index
      %c0_63 = arith.constant 0 : index
      %c0_64 = arith.constant 0 : index
      %c0_65 = arith.constant 0 : index
      %91 = vector.load %arg11[%c0_62, %c0_63, %c0_64, %c0_65] : memref<1x2x8x1xf32, #tpu.memory_space<vmem>>, vector<1x1x8x1xf32>
      %92 = vector.shape_cast %91 : vector<1x1x8x1xf32> to vector<8x1xf32>
      %cst_66 = arith.constant dense<0.000000e+00> : vector<8xf32>
      %93 = vector.multi_reduction <add>, %77, %cst_66 [1] : vector<8x256xf32> to vector<8xf32>
      %94 = vector.shape_cast %93 : vector<8xf32> to vector<8x1xf32>
      %95 = arith.addf %92, %94 : vector<8x1xf32>
      %c0_67 = arith.constant 0 : index
      %c0_68 = arith.constant 0 : index
      %c0_69 = arith.constant 0 : index
      %c0_70 = arith.constant 0 : index
      %96 = vector.load %arg11[%c0_67, %c0_68, %c0_69, %c0_70] : memref<1x2x8x1xf32, #tpu.memory_space<vmem>>, vector<1x1x8x1xf32>
      %97 = vector.shape_cast %96 : vector<1x1x8x1xf32> to vector<8x1xf32>
      %98 = vector.shape_cast %95 : vector<8x1xf32> to vector<1x1x8x1xf32>
      tpu.vector_store %arg11[%c0_67, %c0_68, %c0_69, %c0_70], %98 {strides = array<i32>} : memref<1x2x8x1xf32, #tpu.memory_space<vmem>>, vector<1x1x8x1xf32>,
      %c0_71 = arith.constant 0 : index
      %c1_72 = arith.constant 1 : index
      %c0_73 = arith.constant 0 : index
      %c0_74 = arith.constant 0 : index
      %99 = vector.load %arg11[%c0_71, %c1_72, %c0_73, %c0_74] : memref<1x2x8x1xf32, #tpu.memory_space<vmem>>, vector<1x1x8x1xf32>
      %100 = vector.shape_cast %99 : vector<1x1x8x1xf32> to vector<8x1xf32>
      %101 = arith.mulf %77, %77 : vector<8x256xf32>
      %cst_75 = arith.constant dense<0.000000e+00> : vector<8xf32>
      %102 = vector.multi_reduction <add>, %101, %cst_75 [1] : vector<8x256xf32> to vector<8xf32>
      %103 = vector.shape_cast %102 : vector<8xf32> to vector<8x1xf32>
      %104 = arith.addf %100, %103 : vector<8x1xf32>
      %c0_76 = arith.constant 0 : index
      %c1_77 = arith.constant 1 : index
      %c0_78 = arith.constant 0 : index
      %c0_79 = arith.constant 0 : index
      %105 = vector.load %arg11[%c0_76, %c1_77, %c0_78, %c0_79] : memref<1x2x8x1xf32, #tpu.memory_space<vmem>>, vector<1x1x8x1xf32>
      %106 = vector.shape_cast %105 : vector<1x1x8x1xf32> to vector<8x1xf32>
      %107 = vector.shape_cast %104 : vector<8x1xf32> to vector<1x1x8x1xf32>
      tpu.vector_store %arg11[%c0_76, %c1_77, %c0_78, %c0_79], %107 {strides = array<i32>} : memref<1x2x8x1xf32, #tpu.memory_space<vmem>>, vector<1x1x8x1xf32>,
    } else {
    }
    %c0_i32_57 = arith.constant 0 : i32
    %84 = arith.cmpi sge, %arg1, %c0_i32_57 : i32
    %85 = arith.extui %84 : i1 to i32
    %c0_i32_58 = arith.constant 0 : i32
    %86 = arith.cmpi ne, %85, %c0_i32_58 : i32
    scf.if %86 {
      %91 = tpu.iota {dimensions = array<i32: 1>} : vector<1x256xi32>
      %c256_i32 = arith.constant 256 : i32
      %92 = arith.muli %arg1, %c256_i32 : i32
      %93 = vector.broadcast %92 : i32 to vector<1x256xi32>
      %94 = arith.addi %91, %93 : vector<1x256xi32>
      %c27_i32 = arith.constant 27 : i32
      %95 = vector.broadcast %c27_i32 : i32 to vector<1x256xi32>
      %96 = arith.cmpi slt, %94, %95 : vector<1x256xi32>
      %cst_62 = arith.constant 0.000000e+00 : f32
      %97 = vector.shape_cast %96 : vector<1x256xi1> to vector<1x256xi1>
      %98 = vector.broadcast %97 : vector<1x256xi1> to vector<8x256xi1>
      %99 = vector.broadcast %cst_62 : f32 to vector<8x256xf32>
      %100 = arith.select %98, %77, %99 : vector<8x256xi1>, vector<8x256xf32>
      %c0_63 = arith.constant 0 : index
      %c0_64 = arith.constant 0 : index
      %c0_65 = arith.constant 0 : index
      %c0_66 = arith.constant 0 : index
      %101 = vector.load %arg11[%c0_63, %c0_64, %c0_65, %c0_66] : memref<1x2x8x1xf32, #tpu.memory_space<vmem>>, vector<1x1x8x1xf32>
      %102 = vector.shape_cast %101 : vector<1x1x8x1xf32> to vector<8x1xf32>
      %cst_67 = arith.constant dense<0.000000e+00> : vector<8xf32>
      %103 = vector.multi_reduction <add>, %100, %cst_67 [1] : vector<8x256xf32> to vector<8xf32>
      %104 = vector.shape_cast %103 : vector<8xf32> to vector<8x1xf32>
      %105 = arith.addf %102, %104 : vector<8x1xf32>
      %c0_68 = arith.constant 0 : index
      %c0_69 = arith.constant 0 : index
      %c0_70 = arith.constant 0 : index
      %c0_71 = arith.constant 0 : index
      %106 = vector.load %arg11[%c0_68, %c0_69, %c0_70, %c0_71] : memref<1x2x8x1xf32, #tpu.memory_space<vmem>>, vector<1x1x8x1xf32>
      %107 = vector.shape_cast %106 : vector<1x1x8x1xf32> to vector<8x1xf32>
      %108 = vector.shape_cast %105 : vector<8x1xf32> to vector<1x1x8x1xf32>
      tpu.vector_store %arg11[%c0_68, %c0_69, %c0_70, %c0_71], %108 {strides = array<i32>} : memref<1x2x8x1xf32, #tpu.memory_space<vmem>>, vector<1x1x8x1xf32>,
      %c0_72 = arith.constant 0 : index
      %c1_73 = arith.constant 1 : index
      %c0_74 = arith.constant 0 : index
      %c0_75 = arith.constant 0 : index
      %109 = vector.load %arg11[%c0_72, %c1_73, %c0_74, %c0_75] : memref<1x2x8x1xf32, #tpu.memory_space<vmem>>, vector<1x1x8x1xf32>
      %110 = vector.shape_cast %109 : vector<1x1x8x1xf32> to vector<8x1xf32>
      %111 = arith.mulf %100, %100 : vector<8x256xf32>
      %cst_76 = arith.constant dense<0.000000e+00> : vector<8xf32>
      %112 = vector.multi_reduction <add>, %111, %cst_76 [1] : vector<8x256xf32> to vector<8xf32>
      %113 = vector.shape_cast %112 : vector<8xf32> to vector<8x1xf32>
      %114 = arith.addf %110, %113 : vector<8x1xf32>
      %c0_77 = arith.constant 0 : index
      %c1_78 = arith.constant 1 : index
      %c0_79 = arith.constant 0 : index
      %c0_80 = arith.constant 0 : index
      %115 = vector.load %arg11[%c0_77, %c1_78, %c0_79, %c0_80] : memref<1x2x8x1xf32, #tpu.memory_space<vmem>>, vector<1x1x8x1xf32>
      %116 = vector.shape_cast %115 : vector<1x1x8x1xf32> to vector<8x1xf32>
      %117 = vector.shape_cast %114 : vector<8x1xf32> to vector<1x1x8x1xf32>
      tpu.vector_store %arg11[%c0_77, %c1_78, %c0_79, %c0_80], %117 {strides = array<i32>} : memref<1x2x8x1xf32, #tpu.memory_space<vmem>>, vector<1x1x8x1xf32>,
    } else {
    }
    %87 = arith.truncf %77 : vector<8x256xf32> to vector<8x256xbf16>
    %c0_59 = arith.constant 0 : index
    %c0_60 = arith.constant 0 : index
    %c0_61 = arith.constant 0 : index
    %88 = vector.load %arg10[%c0_59, %c0_60, %c0_61] : memref<1x8x256xbf16, #tpu.memory_space<vmem>>, vector<1x8x256xbf16>
    %89 = vector.shape_cast %88 : vector<1x8x256xbf16> to vector<8x256xbf16>
    %90 = vector.shape_cast %87 : vector<8x256xbf16> to vector<1x8x256xbf16>
    tpu.vector_store %arg10[%c0_59, %c0_60, %c0_61], %90 {strides = array<i32>} : memref<1x8x256xbf16, #tpu.memory_space<vmem>>, vector<1x8x256xbf16>,
    return
  }
  func.func @transform_0(%arg0: i32, %arg1: i32) -> (i32, i32, i32) {
    %c0_i32 = arith.constant 0 : i32
    %c0_i32_0 = arith.constant 0 : i32
    return %arg0, %c0_i32, %arg1 : i32, i32, i32
  }
  func.func @transform_1(%arg0: i32, %arg1: i32) -> (i32, i32, i32) {
    %c1_i32 = arith.constant 1 : i32
    %0 = arith.addi %arg1, %c1_i32 : i32
    %c2_i32 = arith.constant 2 : i32
    %1 = arith.muli %0, %c2_i32 : i32
    %c0_i32 = arith.constant 0 : i32
    %c0_i32_0 = arith.constant 0 : i32
    return %arg0, %c0_i32, %1 : i32, i32, i32
  }
  func.func @transform_2(%arg0: i32, %arg1: i32) -> (i32, i32, i32) {
    %c0_i32 = arith.constant 0 : i32
    %c0_i32_0 = arith.constant 0 : i32
    return %arg0, %c0_i32, %arg1 : i32, i32, i32
  }
  func.func @transform_3(%arg0: i32, %arg1: i32) -> (i32, i32, i32) {
    %c1_i32 = arith.constant 1 : i32
    %0 = arith.addi %arg1, %c1_i32 : i32
    %c2_i32 = arith.constant 2 : i32
    %1 = arith.muli %0, %c2_i32 : i32
    %c0_i32 = arith.constant 0 : i32
    %c0_i32_0 = arith.constant 0 : i32
    return %arg0, %c0_i32, %1 : i32, i32, i32
  }
  func.func @transform_4(%arg0: i32, %arg1: i32) -> (i32, i32, i32, i32) {
    %c0_i32 = arith.constant 0 : i32
    %c0_i32_0 = arith.constant 0 : i32
    %c0_i32_1 = arith.constant 0 : i32
    %c0_i32_2 = arith.constant 0 : i32
    return %arg0, %c0_i32, %c0_i32_0, %c0_i32_1 : i32, i32, i32, i32
  }
  func.func @transform_5(%arg0: i32, %arg1: i32) -> (i32, i32, i32) {
    %c0_i32 = arith.constant 0 : i32
    %c0_i32_0 = arith.constant 0 : i32
    %c0_i32_1 = arith.constant 0 : i32
    %c0_i32_2 = arith.constant 0 : i32
    return %c0_i32, %c0_i32_0, %c0_i32_1 : i32, i32, i32
  }
  func.func @transform_6(%arg0: i32, %arg1: i32) -> (i32, i32, i32) {
    %c0_i32 = arith.constant 0 : i32
    %c0_i32_0 = arith.constant 0 : i32
    %c0_i32_1 = arith.constant 0 : i32
    %c0_i32_2 = arith.constant 0 : i32
    return %c0_i32, %c0_i32_0, %c0_i32_1 : i32, i32, i32
  }
  func.func @transform_7(%arg0: i32, %arg1: i32) -> (i32, i32) {
    %c0_i32 = arith.constant 0 : i32
    %c0_i32_0 = arith.constant 0 : i32
    %c0_i32_1 = arith.constant 0 : i32
    return %c0_i32, %c0_i32_0 : i32, i32
  }
  func.func @transform_8(%arg0: i32, %arg1: i32) -> (i32, i32, i32) {
    %c0_i32 = arith.constant 0 : i32
    %c0_i32_0 = arith.constant 0 : i32
    return %arg0, %c0_i32, %arg1 : i32, i32, i32
  }
  func.func @transform_9(%arg0: i32, %arg1: i32) -> (i32, i32, i32, i32) {
    %c0_i32 = arith.constant 0 : i32
    %c0_i32_0 = arith.constant 0 : i32
    %c0_i32_1 = arith.constant 0 : i32
    %c0_i32_2 = arith.constant 0 : i32
    return %arg0, %c0_i32, %c0_i32_0, %c0_i32_1 : i32, i32, i32, i32
  }
}

module attributes {stable_mosaic.version = 11 : i64} {
  func.func @_norm_relu_crop_kernel(%arg0: i32, %arg1: i32, %arg2: memref<1x8x256xbf16, #tpu.memory_space<vmem>>, %arg3: memref<1x2x8x1xf32, #tpu.memory_space<vmem>>, %arg4: memref<1x8x256xf32, #tpu.memory_space<vmem>>) attributes {dimension_semantics = [#tpu.dimension_semantics<parallel>, #tpu.dimension_semantics<arbitrary>], iteration_bounds = array<i64: 2, 1>, scalar_prefetch = 0 : i64, scratch_operands = 0 : i64, tpu.core_type = #tpu.core_type<tc>, window_params = [{transform_indices = @transform_0, window_bounds = array<i64: 1, 8, 256>}, {transform_indices = @transform_1, window_bounds = array<i64: 1, 2, 8, 1>}, {transform_indices = @transform_2, window_bounds = array<i64: 1, 8, 256>}]} {
    %c0 = arith.constant 0 : index
    %c0_0 = arith.constant 0 : index
    %c0_1 = arith.constant 0 : index
    %0 = vector.load %arg2[%c0, %c0_0, %c0_1] : memref<1x8x256xbf16, #tpu.memory_space<vmem>>, vector<1x8x256xbf16>
    %1 = vector.shape_cast %0 : vector<1x8x256xbf16> to vector<8x256xbf16>
    %2 = arith.extf %1 : vector<8x256xbf16> to vector<8x256xf32>
    %c0_2 = arith.constant 0 : index
    %c0_3 = arith.constant 0 : index
    %c0_4 = arith.constant 0 : index
    %c0_5 = arith.constant 0 : index
    %3 = vector.load %arg3[%c0_2, %c0_3, %c0_4, %c0_5] : memref<1x2x8x1xf32, #tpu.memory_space<vmem>>, vector<1x2x8x1xf32>
    %4 = vector.shape_cast %3 : vector<1x2x8x1xf32> to vector<2x8x1xf32>
    %5 = vector.extract_strided_slice %4 {offsets = [0, 0, 0], sizes = [1, 8, 1], strides = [1, 1, 1]} : vector<2x8x1xf32> to vector<1x8x1xf32>
    %6 = vector.shape_cast %5 : vector<1x8x1xf32> to vector<8x1xf32>
    %7 = vector.broadcast %6 : vector<8x1xf32> to vector<8x256xf32>
    %8 = arith.mulf %2, %7 : vector<8x256xf32>
    %9 = vector.extract_strided_slice %4 {offsets = [1, 0, 0], sizes = [1, 8, 1], strides = [1, 1, 1]} : vector<2x8x1xf32> to vector<1x8x1xf32>
    %10 = vector.shape_cast %9 : vector<1x8x1xf32> to vector<8x1xf32>
    %11 = vector.broadcast %10 : vector<8x1xf32> to vector<8x256xf32>
    %12 = arith.addf %8, %11 : vector<8x256xf32>
    %cst = arith.constant 0.000000e+00 : f32
    %13 = vector.broadcast %cst : f32 to vector<8x256xf32>
    %14 = arith.maximumf %12, %13 : vector<8x256xf32>
    %c0_6 = arith.constant 0 : index
    %c0_7 = arith.constant 0 : index
    %c0_8 = arith.constant 0 : index
    %15 = vector.load %arg4[%c0_6, %c0_7, %c0_8] : memref<1x8x256xf32, #tpu.memory_space<vmem>>, vector<1x8x256xf32>
    %16 = vector.shape_cast %15 : vector<1x8x256xf32> to vector<8x256xf32>
    %17 = vector.shape_cast %14 : vector<8x256xf32> to vector<1x8x256xf32>
    tpu.vector_store %arg4[%c0_6, %c0_7, %c0_8], %17 {strides = array<i32>} : memref<1x8x256xf32, #tpu.memory_space<vmem>>, vector<1x8x256xf32>,
    return
  }
  func.func @transform_0(%arg0: i32, %arg1: i32) -> (i32, i32, i32) {
    %c0_i32 = arith.constant 0 : i32
    %c0_i32_0 = arith.constant 0 : i32
    return %arg0, %c0_i32, %arg1 : i32, i32, i32
  }
  func.func @transform_1(%arg0: i32, %arg1: i32) -> (i32, i32, i32, i32) {
    %c0_i32 = arith.constant 0 : i32
    %c0_i32_0 = arith.constant 0 : i32
    %c0_i32_1 = arith.constant 0 : i32
    %c0_i32_2 = arith.constant 0 : i32
    return %arg0, %c0_i32, %c0_i32_0, %c0_i32_1 : i32, i32, i32, i32
  }
  func.func @transform_2(%arg0: i32, %arg1: i32) -> (i32, i32, i32) {
    %c0_i32 = arith.constant 0 : i32
    %c0_i32_0 = arith.constant 0 : i32
    return %arg0, %c0_i32, %arg1 : i32, i32, i32
  }
}

</mosaic_0001>

<bundles_post_ra>
// kernel: upsampling_block_forward.7
= control target key start
LH: loop header
LB: loop body
LE: loop exit
PB: predicated region body
PF: predicated region fallthrough
CT: control target
= control target key end

     0   :  { %7 = vsyncpa [#allocation3], 0  ;;  %s586_s0 = inlined_call_operand.vmem [shape: bf16[2,8,256], index: 0, kind: input, shape index: {}]   ;;  %s587_s1 = inlined_call_operand.vmem [shape: f32[2,2,8,1], index: 1, kind: input, shape index: {}]   ;;  %s588_s2 = inlined_call_operand.hbm [shape: f32[2,8,27], index: 2, kind: output, shape index: {}]  }
   0x1   :  { %9 = vsyncpa [#allocation3 + $0x1], 0  ;;  %s488_s9 = smov 0   ;;  %s490_s10 = smov 0  }
   0x2   :  { %s492_s11 = smov 0   ;;  %s494_s12 = smov 0  }
   0x3   :  { %s496_s13 = smov 0   ;;  %s498_s14 = smov 0  }
   0x4 LB: > { %s325_s15 = sadd.s32 4294967295, %s469_s14   ;;  %s326_s16 = sadd.s32 4294967294, %s469_s14   ;;  %s469_s14 = sphi %s498_s14, %s15_s14   ;;  %s465_s13 = sphi %s496_s13, %s595_s13   ;;  %s461_s12 = sphi %s494_s12, %s594_s12   ;;  %s457_s11 = sphi %s492_s11, %s593_s11   ;;  %s453_s10 = sphi %s490_s10, %s592_s10   ;;  %s449_s9 = sphi %s488_s9, %s591_s9  }
   0x5   : > { %s27_s17 = sadd.s32 1, %s465_s13  ;;  %s90_s18 = sadd.s32 1, %s457_s11 }
   0x6   : > { %p29_p0 = scmp.ge.s32.totalorder %s27_s17, 2  ;;  %p100_p1 = scmp.ne.s32.totalorder %s457_s11, %s453_s10 }
   0x7   : > { %p101_p2 = scmp.eq.s32.totalorder %s325_s15, 1  ;;  %p106_p3 = scmp.ne.s32.totalorder %s453_s10, %s449_s9 }
   0x8   : > { %s597_s17 = smov (%p29_p0, %s27_s17), 0  ;;  %p107_p5 = scmp.eq.s32.totalorder %s326_s16, 1 }
   0x9   : > { %p528_p4 = por %p101_p2, %p100_p1  ;;  %s85_s20 = ssub.s32 %s465_s13, %s597_s17 }
   0xa   : > { %p329_p6 = scmp.ge.s32.totalorder %s469_s14, 1  ;;  %p88_p7 = scmp.eq.s32.totalorder %s85_s20, 0 }
   0xb   : > { %p535_p8 = por %p107_p5, %p106_p3  ;;  %p146_p9 = scmp.lt.s32.totalorder %s469_s14, 3 }
   0xc   : > { %s541_s22 = scalar_select %p88_p7, %s457_s11, %s90_s18  }
   0xd   : > { %p147_p10 = pnand %p329_p6, %p146_p9 }
   0xe   : > { %p178_p11 = scmp.lt.s32.totalorder (!%p147_p10), %s461_s12, 1  ;;  %s174_s28 = sand.u32 (!%p147_p10), 1, %s453_s10  }
   0xf   : > { %150 = sbr.rel (%p147_p10) target bundleno = 180 (0xb4), region = 28  ;;  %s330_s5 = sshll.u32 (!%p147_p10), %s174_s28, 4 }
  0x10   : > { %s176_s6 = scalar_lea.vmem (!%p147_p10), [#allocation2], %s330_s5  ;;  %s219_s7 = scalar_lea.sflag (!%p147_p10), [#allocation3], %s174_s28 }
  0x14   : > { %v471_v0 = vmov 0   ;;  %s179_s23 = scalar_select %p178_p11, %s461_s12, 1 }
  0x15   : > { %396 = vset.pattern.permute.xlu0 %v471_v0 }
  0x16   : > { %s340_s24 = sshll.u32 %s179_s23, 4  ;;  %s339_s29 = sshll.u32 %s179_s23, 3 }
  0x17   : > { %s191_s27 = scalar_lea.vmem %s587_s1, %s340_s24  ;;  %s185_s4 = scalar_lea.vmem %s586_s0, %s339_s29 }
  0x18   : > { %v198_v1 = vld [vmem:[%s191_s27] sm:$0xff]  ;;  %v199_v2 = vld [vmem:[%s191_s27 + $0x8] sm:$0xff] }
  0x19   : > { %202 = vperm.xlu0 %396, %v198_v1   ;;  %v195_v3 = vld [vmem:[%s185_s4] sm:$0xff] }
  0x1a   : > { %v196_v4 = vunpack.c.l.bf16 %v195_v3  ;;  %v197_v5 = vunpack.c.h.bf16 %v195_v3 }
  0x1d   : > { %209 = vperm.xlu0 %396, %v199_v2  }
  0x94   : > { %v203_v6 = vpop.permute.xlu0 %202 }
  0x95   : > { %v205_v7 = vmul.f32 %v203_v6, %v196_v4  ;;  %v206_v8 = vmul.f32 %v203_v6, %v197_v5 }
  0x98   : > { %v210_v9 = vpop.permute.xlu0 %209 }
  0x99   : > { %v212_v10 = vadd.f32 %v210_v9, %v205_v7  ;;  %v213_v11 = vadd.f32 %v210_v9, %v206_v8  ;;  %225 = sbr.rel (!%p528_p4) target bundleno = 180 (0xb4), region = 32 }
  0x9b   : > { %v214_v12 = vmax.f32 %v212_v10, 0.0  ;;  %v215_v13 = vmax.f32 %v213_v11, 0.0 }
  0x9d   : > { %216 = vst [vmem:[%s176_s6] sm:$0xff] %v214_v12  ;;  %217 = vst [vmem:[%s176_s6 + $0x8] sm:$0xff] %v215_v13 }
  0x9e   : > { %231 = vsyncadd %s219_s7, 128  ;;  %s336_s8 = sshll.u32 %s461_s12, 7  ;;  %s238_s15 = sshll.u32 %s176_s6, 4  ;;  %s239_s15 = int_to_ptr.vmem [resolvable:$true] %s238_s15 }
  0x9f   : > { %s235_s20 = scalar_lea.hbm %s588_s2, %s336_s8  ;;  %s397_s23 = scalar_lea.vmem %s239_s15, 128 }
  0xa0   : > { %p398_p12 = scmp.ne.s32.totalorder %s239_s15, %s397_s23  ;;  %s472_s24 = smov [#allocation2]  }
  0xa1   : > { %s399_s25 = sshll.u32 %s472_s24, 4  ;;  %s400_s25 = int_to_ptr.vmem [resolvable:$false] %s399_s25 }
  0xa2   : > { %s401_s26 = scalar_lea.vmem %s400_s25, 512  ;;  %p402_p13 = scmp.lt.s32.totalorder %s239_s15, %s400_s25 }
  0xa3   : > { %p403_p0 = scmp.lt.s32.totalorder %s401_s26, %s397_s23 }
  0xa5   : > { %p404_p1 = por %p403_p0, %p402_p13 }
  0xa7   : > { %p405_p2 = pnand %p404_p1, %p398_p12 }
  0xa9   : > { %408 = shalt.err (!%p405_p2)
}
  0xaa   : > { %s409_s19 = scalar_lea.hbm %s235_s20, 128  ;;  %s411_s28 = scalar_lea.hbm %s588_s2, 256 }
  0xab   : > { %p410_p3 = scmp.ne.s32.totalorder %s235_s20, %s409_s19  ;;  %p412_p4 = scmp.lt.s32.totalorder %s235_s20, %s588_s2 }
  0xac   : > { %p413_p5 = scmp.lt.s32.totalorder %s411_s28, %s409_s19 }
  0xae   : > { %p414_p6 = por %p413_p5, %p412_p4 }
  0xb0   : > { %p415_p7 = pnand %p414_p6, %p410_p3 }
  0xb2   : > { %418 = shalt.err (!%p415_p7)
}
  0xb3   : > { %241 = dma.vmem_to_hbm [thread:$0]  %s239_s15, 128, %s235_s20, %s219_s7  }
  0xb4 PF: > { %p346_p9 = scmp.ge.s32.totalorder %s469_s14, 2  ;;  %s250_s3 = sand.u32 1, %s449_s9  }
  0xb5   : > { %s251_s4 = scalar_lea.sflag [#allocation3], %s250_s3 }
  0xb6   : > { %p343_p10 = pnand %p346_p9, %p535_p8 }
  0xb8   : > { %p344_p11 = pneg %p343_p10 }
  0xba   : > { %444 = dma.done.wait (%p344_p11), %s251_s4, 256  }
  0xbb   : > { %446 = vsyncadd (%p344_p11), %s251_s4, 4294967040  ;;  %s15_s14 = sadd.s32 1, %s469_s14   ;;  %s591_s9 = smov %s453_s10 }
  0xbc   : > { %p12_p12 = scmp.ge.s32.totalorder %s15_s14, 4   ;;  %s592_s10 = smov %s457_s11 }
  0xbd   : > { %s593_s11 = smov %s541_s22  ;;  %s594_s12 = smov %s465_s13 }
  0xbe   : > { %s595_s13 = smov %s597_s17  ;;  %14 = sbr.rel (!%p12_p12) target bundleno = 4 (0x4), region = 66 }
  0xc3   :  { %256 = vsyncpa [#allocation3], 1 }
  0xc4   :  { %258 = vsyncpa [#allocation3 + $0x1], 1 }

// kernel: upsampling_block_forward.5
= control target key start
LH: loop header
LB: loop body
LE: loop exit
PB: predicated region body
PF: predicated region fallthrough
CT: control target
= control target key end

     0   :  { %s1129_s21 = smov 0   ;;  %s1131_s22 = smov 0   ;;  %s1250_s0 = inlined_call_operand.vmem [shape: bf16[2,8,768], index: 0, kind: input, shape index: {}, may-alias: {0,1}]   ;;  %s1251_s1 = inlined_call_operand.vmem [shape: bf16[2,8,768], index: 1, kind: input, shape index: {}, may-alias: {0,1}]   ;;  %s1252_s2 = inlined_call_operand.vmem [shape: f32[2,2,8,1], index: 2, kind: input, shape index: {}]   ;;  %s1253_s3 = inlined_call_operand.vmem [shape: bf16[5,8,8], index: 3, kind: input, shape index: {}]   ;;  %s1254_s4 = inlined_call_operand.vmem [shape: f32[8,1], index: 4, kind: input, shape index: {}]   ;;  %s1255_s5 = inlined_call_operand.vmem [shape: bf16[2,8,512], index: 5, kind: output, shape index: {0}]   ;;  %s1256_s6 = inlined_call_operand.vmem [shape: f32[2,2,8,1], index: 6, kind: output, shape index: {1}]  }
   0x1   :  { %s1133_s23 = smov 0   ;;  %s1135_s24 = smov 0  }
   0x2   :  { %s1137_s25 = smov 0  }
   0x3 LB: > { %s26_s26 = sadd.s32 1, %s1078_s23  ;;  %s29_s27 = sadd.s32 1, %s1082_s24  ;;  %s1086_s25 = sphi %s1137_s25, %s17_s25   ;;  %s1082_s24 = sphi %s1135_s24, %s1260_s24   ;;  %s1078_s23 = sphi %s1133_s23, %s1259_s23   ;;  %s1074_s22 = sphi %s1131_s22, %s1258_s22   ;;  %s1070_s21 = sphi %s1129_s21, %s1257_s21  }
   0x4   : > { %p27_p0 = scmp.ge.s32.totalorder %s26_s26, 2  ;;  %p950_p1 = scmp.ge.s32.totalorder %s1086_s25, 1 }
   0x5   : > { %p269_p2 = scmp.lt.s32.totalorder %s1086_s25, 5 }
   0x6   : > { %s1262_s26 = smov (%p27_p0, %s26_s26), 0  ;;  %s1264_s27 = smov (!%p27_p0, %s29_s27), %s1082_s24 }
   0x7   : > { %p270_p3 = pnand %p950_p1, %p269_p2  ;;  %p31_p4 = scmp.ge.s32.totalorder %s1264_s27, 2 }
   0x8   : > { %p328_p5 = scmp.lt.s32.totalorder (!%p270_p3), %s1074_s22, 1  ;;  %s951_s28 = sshll.u32 (!%p270_p3), %s1070_s21, 1 }
   0x9   : > { %s1266_s27 = smov (%p31_p4, %s1264_s27), 0  ;;  %273 = sbr.rel (%p270_p3) target bundleno = 820 (0x334), region = 40 }
   0xa   : > { %p357_p6 = scmp.lt.s32.totalorder (!%p270_p3), %s951_s28, 3  ;;  %p330_p7 = scmp.lt.s32.totalorder (!%p270_p3), %s951_s28, 5 }
   0xb   : > { %s994_s19 = sadd.s32 (!%p270_p3), 2, %s951_s28  ;;  %s1090_s17 = smov (!%p270_p3), 126  }
   0xc   : > { %p341_p8 = scmp.lt.s32.totalorder (!%p270_p3), %s994_s19, 5  ;;  %p978_p9 = scmp.ne.s32.totalorder (!%p270_p3), %s1070_s21, 0 }
   0xe   : > { %v1088_v0 = vmov 0   ;;  %s1268_s22 = smov (!%p328_p5, %s1074_s22), 1  ;;  %s1272_s19 = smov (!%p341_p8, %s994_s19), 5  ;;  %vm425_vm0 = vcmask 1043456   ;;  %v406_v25 = vld [vmem:[%s1253_s3] sm:$0xf] }
   0xf   : > { %1045 = vset.pattern.permute.xlu0 %v1088_v0  ;;  %464 = vmatprep.mubr.bf16.mxu0 %v1088_v0  ;;  %s358_s29 = scalar_select %p357_p6, %s951_s28, 3  ;;  %vm421_vm1 = vcmask 64512   ;;  %v712_v26 = vld [vmem:[%s1254_s4] sm:$0xff]  ;;  %vm418_vm2 = vcmask 1039360   ;;  %vm531_vm3 = vcmask 1031168   ;;  %vm594_vm4 = vcmask 1022976  }
  0x10   : > { %514 = vmatprep.mubr.bf16.mxu1 %v1088_v0  ;;  %s995_s30 = sshll.u32 %s1268_s22, 4  ;;  %s958_s7 = sshll.u32 %s1268_s22, 2  ;;  %v964_v34 = vld [vmem:[%s1253_s3 + $0x4] sm:$0xf]  ;;  %v969_v41 = vld [vmem:[%s1253_s3 + $0x8] sm:$0xf] }
  0x11   : > { %s353_s10 = scalar_lea.vmem %s1252_s2, %s995_s30  ;;  %s1171_s13 = scalar_lea.vmem %s1256_s6, %s995_s30  ;;  %v972_v47 = vld [vmem:[%s1253_s3 + $0xc] sm:$0xf]  ;;  %vm657_vm5 = vcmask 1014784   ;;  %v975_v54 = vld [vmem:[%s1253_s3 + $0x10] sm:$0xf] }
  0x12   : > { %v379_v1 = vld [vmem:[%s353_s10] sm:$0xff]  ;;  %s360_s14 = sadd.s32 %s958_s7, %s358_s29  ;;  %v380_v2 = vld [vmem:[%s353_s10 + $0x8] sm:$0xff]  ;;  %s998_s20 = smul.u32 6, %s1268_s22 }
  0x13   : > { %386 = vperm.xlu0 %1045, %v379_v1   ;;  %s959_s15 = sshll.u32 %s360_s14, 2  ;;  %s1270_s28 = smov (!%p330_p7, %s951_s28), 5 }
  0x14   : > { %s1176_s18 = scalar_lea.vmem %s1255_s5, %s959_s15  ;;  %s333_s8 = sadd.s32 %s998_s20, %s1270_s28 }
  0x15   : > { %s952_s30 = sshll.u32 %s333_s8, 2  ;;  %s344_s9 = sadd.s32 %s998_s20, %s1272_s19 }
  0x16   : > { %s335_s7 = scalar_lea.vmem %s1250_s0, %s952_s30  ;;  %s954_s12 = sshll.u32 %s344_s9, 2 }
  0x17   : > { %394 = vperm.xlu0 %1045, %v380_v2   ;;  %v370_v3 = vld [vmem:[%s335_s7] sm:$0xff]  ;;  %s346_s10 = scalar_lea.vmem %s1251_s1, %s954_s12  ;;  %s1089_s22 = smov 127  }
  0x18   : > { %v962_v4 = vcombine.low %v370_v3, %v370_v3  ;;  %v963_v5 = vcombine.high %v370_v3, %v370_v3  ;;  %v371_v6 = vld [vmem:[%s346_s10] sm:$0xf]  ;;  %s1091_s19 = smov 125   ;;  %s1092_s20 = smov 124  }
  0x19   : > { %v383_v9 = vunpack.c.l.bf16 %v371_v6 }
  0x1a   : > { %v381_v7 = vunpack.c.l.bf16 %v962_v4  ;;  %v382_v8 = vunpack.c.l.bf16 %v963_v5 }
  0x8e   : > { %v387_v10 = vpop.permute.xlu0 %386 }
  0x8f   : > { %v389_v11 = vmul.f32 %v387_v10, %v381_v7  ;;  %v390_v12 = vmul.f32 %v387_v10, %v382_v8  ;;  %v391_v13 = vmul.f32 %v387_v10, %v383_v9 }
  0x92   : > { %v395_v14 = vpop.permute.xlu0 %394 }
  0x93   : > { %v397_v15 = vadd.f32 %v395_v14, %v389_v11  ;;  %v398_v16 = vadd.f32 %v395_v14, %v390_v12  ;;  %v399_v17 = vadd.f32 %v395_v14, %v391_v13 }
  0x95   : > { %v400_v18 = vmax.f32 %v397_v15, 0.0  ;;  %v401_v19 = vmax.f32 %v398_v16, 0.0  ;;  %v402_v20 = vmax.f32 %v399_v17, 0.0 }
  0x97   : > { %v403_v21 = vpack.c.bf16 %v400_v18, %v400_v18  ;;  %v404_v22 = vpack.c.bf16 %v401_v19, %v401_v19  ;;  %v405_v23 = vpack.c.bf16 %v402_v20, %v402_v20 }
  0x99   : > { %416 = vrot.lane.b32.xlu0 %v405_v23, %s1089_s22  ;;  %967 = vmatprep.subr.msk.bf16.mxu1 %vm425_vm0, %v404_v22  ;;  %v477_v24 = vsel %vm425_vm0, %v403_v21, 0 }
  0x9a   : > { %412 = vrot.lane.b32.xlu1 %v403_v21, %s1089_s22  ;;  %497 = vmatpush1.bf16.msra.mxu1 %v477_v24 }
  0x9d   : > { %527 = vrot.lane.b32.xlu0 %v404_v22, %s1090_s17  ;;  %968 = vmatmul.mubr.msk.bf16.vlgmr.msra.gmra.mxu1 %vm421_vm1, %v406_v25 }
  0x9e   : > { %414 = vrot.lane.b32.xlu1 %v404_v22, %s1089_s22  ;;  %638 = vmatprep.mubr.bf16.mxu1 %v1088_v0 }
  0xa1   : > { %588 = vrot.lane.b32.xlu0 %v403_v21, %s1091_s19 }
  0xa2   : > { %525 = vrot.lane.b32.xlu1 %v403_v21, %s1090_s17 }
  0xa5   : > { %592 = vrot.lane.b32.xlu0 %v405_v23, %s1091_s19 }
  0xa6   : > { %529 = vrot.lane.b32.xlu1 %v405_v23, %s1090_s17 }
  0xa9   : > { %653 = vrot.lane.b32.xlu0 %v404_v22, %s1092_s20 }
  0xaa   : > { %590 = vrot.lane.b32.xlu1 %v404_v22, %s1091_s19 }
  0xad   : > { %715 = vperm.xlu0 %1045, %v712_v26  }
  0xae   : > { %651 = vrot.lane.b32.xlu1 %v403_v21, %s1092_s20 }
  0xb2   : > { %655 = vrot.lane.b32.xlu1 %v405_v23, %s1092_s20 }
 0x10b   : > { %v417_v27 = vpop.permute.xlu0 %416 }
 0x10c   : > { %v413_v28 = vpop.permute.xlu1 %412 }
 0x10f   : > { %v528_v29 = vpop.permute.xlu0 %527 }
 0x110   : > { %v415_v30 = vpop.permute.xlu1 %414 }
 0x111   : > { %v420_v31 = vsel %vm418_vm2, %v415_v30, %v417_v27  ;;  %v419_v32 = vsel %vm418_vm2, %v413_v28, %v415_v30 }
 0x112   : > { %965 = vmatprep.subr.msk.bf16.mxu0 %vm425_vm0, %v420_v31  ;;  %v427_v33 = vsel %vm425_vm0, %v419_v32, 0 }
 0x113   : > { %447 = vmatpush1.bf16.msra.mxu0 %v427_v33  ;;  %v589_v36 = vpop.permute.xlu0 %588 }
 0x114   : > { %v526_v35 = vpop.permute.xlu1 %525 }
 0x115   : > { %v532_v37 = vsel %vm531_vm3, %v526_v35, %v528_v29 }
 0x116   : > { %966 = vmatmul.mubr.msk.bf16.vlgmr.msra.gmra.mxu0 %vm421_vm1, %v964_v34  ;;  %v538_v40 = vsel %vm425_vm0, %v532_v37, 0 }
 0x117   : > { %575 = vmatprep.mubr.bf16.mxu0 %v1088_v0  ;;  %v593_v42 = vpop.permute.xlu0 %592 }
 0x118   : > { %v530_v38 = vpop.permute.xlu1 %529 }
 0x119   : > { %v533_v39 = vsel %vm531_vm3, %v528_v29, %v530_v38 }
 0x11a   : > { %970 = vmatprep.subr.msk.bf16.mxu0 %vm425_vm0, %v533_v39 }
 0x11b   : > { %558 = vmatpush1.bf16.msra.mxu0 %v538_v40  ;;  %v654_v49 = vpop.permute.xlu0 %653 }
 0x11c   : > { %v591_v43 = vpop.permute.xlu1 %590 }
 0x11d   : > { %v595_v44 = vsel %vm594_vm4, %v589_v36, %v591_v43  ;;  %v596_v45 = vsel %vm594_vm4, %v591_v43, %v593_v42 }
 0x11e   : > { %v601_v46 = vsel %vm425_vm0, %v595_v44, 0  ;;  %973 = vmatprep.subr.msk.bf16.mxu1 %vm425_vm0, %v596_v45  ;;  %971 = vmatmul.mubr.msk.bf16.vlgmr.msra.gmra.mxu0 %vm421_vm1, %v969_v41 }
 0x11f   : > { %621 = vmatpush1.bf16.msra.mxu1 %v601_v46  ;;  %701 = vmatprep.mubr.bf16.mxu0 %v1088_v0 }
 0x120   : > { %v652_v48 = vpop.permute.xlu1 %651 }
 0x121   : > { %v658_v50 = vsel %vm657_vm5, %v652_v48, %v654_v49 }
 0x122   : > { %974 = vmatmul.mubr.msk.bf16.vlgmr.msra.gmra.mxu1 %vm421_vm1, %v972_v47  ;;  %v664_v53 = vsel %vm425_vm0, %v658_v50, 0 }
 0x124   : > { %v656_v51 = vpop.permute.xlu1 %655 }
 0x125   : > { %v659_v52 = vsel %vm657_vm5, %v654_v49, %v656_v51 }
 0x126   : > { %976 = vmatprep.subr.msk.bf16.mxu0 %vm425_vm0, %v659_v52 }
 0x127   : > { %684 = vmatpush1.bf16.msra.mxu0 %v664_v53 }
 0x128   : > { %v716_v15 = vpop.permute.xlu0 %715 }
 0x12a   : > { %977 = vmatmul.mubr.msk.bf16.vlgmr.msra.gmra.mxu0 %vm421_vm1, %v975_v54 }
 0x15d   : > { %v516_v55 = vpop.f32.mrf.mxu1 }
 0x15f   : > { %v518_v56 = vpop.f32.mrf.mxu1 }
 0x161   : > { %v520_v57 = vpop.f32.mrf.mxu1 }
 0x163   : > { %v521_v58 = vpop.f32.mrf.mxu1 }
 0x1d6   : > { %v466_v59 = vpop.f32.mrf.mxu0 }
 0x1d7   : > { %v517_v5 = vadd.f32 %v516_v55, %v466_v59 }
 0x1d8   : > { %v468_v60 = vpop.f32.mrf.mxu0 }
 0x1d9   : > { %v519_v7 = vadd.f32 %v518_v56, %v468_v60 }
 0x1da   : > { %v470_v61 = vpop.f32.mrf.mxu0 }
 0x1dc   : > { %v471_v62 = vpop.f32.mrf.mxu0 }
 0x1de   : > { %v577_v63 = vpop.f32.mrf.mxu0 }
 0x1df   : > { %v584_v8 = vadd.f32 %v577_v63, %v517_v5 }
 0x1e0   : > { %v579_v0 = vpop.f32.mrf.mxu0 }
 0x1e1   : > { %v585_v10 = vadd.f32 %v579_v0, %v519_v7 }
 0x1e2   : > { %v640_v1 = vpop.f32.mrf.mxu1  ;;  %v581_v2 = vpop.f32.mrf.mxu0 }
 0x1e3   : > { %v647_v11 = vadd.f32 %v640_v1, %v584_v8 }
 0x1e4   : > { %v642_v3 = vpop.f32.mrf.mxu1  ;;  %v582_v4 = vpop.f32.mrf.mxu0 }
 0x1e5   : > { %v648_v13 = vadd.f32 %v642_v3, %v585_v10 }
 0x1e6   : > { %v644_v6 = vpop.f32.mrf.mxu1 }
 0x1e8   : > { %v645_v9 = vpop.f32.mrf.mxu1 }
 0x1ea   : > { %v703_v12 = vpop.f32.mrf.mxu0 }
 0x1eb   : > { %v710_v14 = vadd.f32 %v703_v12, %v647_v11 }
 0x1ec   : > { %v705_v16 = vpop.f32.mrf.mxu0  ;;  %723 = sbr.rel (%p978_p9) target bundleno = 499 (0x1f3), region = 44 }
 0x1ed   : > { %v718_v17 = vadd.f32 %v716_v15, %v710_v14  ;;  %v711_v18 = vadd.f32 %v705_v16, %v648_v13 }
 0x1ee   : > { %v707_v19 = vpop.f32.mrf.mxu0 }
 0x1ef   : > { %v719_v20 = vadd.f32 %v716_v15, %v711_v18 }
 0x1f0   : > { %v708_v21 = vpop.f32.mrf.mxu0 }
 0x1f1   : > { %vm724_vm6 = vcmask 7168   ;;  %v1093_v22 = vmov 0.0  }
 0x1f2   : > { %725 = vst.msk [vmem:[%s1171_s13] sm:$0xff] %vm724_vm6, %v1093_v22  ;;  %726 = vst.msk [vmem:[%s1171_s13 + $0x8] sm:$0xff] %vm724_vm6, %v1093_v22 }
 0x1f3 PF: > { %p979_p10 = scmp.ge.s32.totalorder %s1070_s21, 0 }
 0x1f5   : > { %730 = sbr.rel (%p979_p10) target bundleno = 653 (0x28d), region = 48 }
 0x1fa   : > { %v732_v23 = vadd.f32 %v719_v20, %v718_v17  ;;  %v740_v24 = vmul.f32 %v718_v17, %v718_v17  ;;  %v741_v25 = vmul.f32 %v719_v20, %v719_v20  ;;  %v731_v27 = vld [vmem:[%s1171_s13] sm:$0xff]  ;;  %vm736_vm7 = vcmask 7168   ;;  %v980_v30 = vld [vmem:[%s1171_s13 + $0x8] sm:$0xff] }
 0x1fc   : > { %733 = vadd.xlane.f32.xlu0 %v732_v23  ;;  %v742_v26 = vadd.f32 %v741_v25, %v740_v24 }
 0x200   : > { %743 = vadd.xlane.f32.xlu0 %v742_v26 }
 0x285   : > { %v734_v28 = vpop.xlane.xlu0 %733 }
 0x286   : > { %v735_v29 = vadd.f32 %v734_v28, %v731_v27 }
 0x288   : > { %737 = vst.msk [vmem:[%s1171_s13] sm:$0xff] %vm736_vm7, %v735_v29 }
 0x289   : > { %v744_v31 = vpop.xlane.xlu0 %743 }
 0x28a   : > { %v745_v32 = vadd.f32 %v980_v30, %v744_v31 }
 0x28c   : > { %981 = vst.msk [vmem:[%s1171_s13 + $0x8] sm:$0xff] %vm736_vm7, %v745_v32 }
 0x28d PF: > { %p982_p11 = scmp.lt.s32.totalorder %s1070_s21, 0 }
 0x28e   : > { %s983_s22 = sshll.u32 (!%p982_p11), %s1070_s21, 8 }
 0x28f   : > { %750 = sbr.rel (%p982_p11) target bundleno = 817 (0x331), region = 52 }
 0x294   : > { %v751_v33 = vlaneseq  ;;  %v755_v34 = vstv %s983_s22  ;;  %v766_v45 = vld [vmem:[%s1171_s13] sm:$0xff]  ;;  %vm771_vm10 = vcmask 7168   ;;  %v984_v48 = vld [vmem:[%s1171_s13 + $0x8] sm:$0xff] }
 0x296   : > { %v752_v35 = vand.u32 127, %v751_v33 }
 0x298   : > { %v753_v36 = vadd.s32 128, %v752_v35  ;;  %v756_v37 = vadd.s32 %v755_v34, %v752_v35 }
 0x29a   : > { %v757_v38 = vadd.s32 %v755_v34, %v753_v36  ;;  %vm758_vm8 = vcmp.lt.s32.totalorder %v756_v37, 31 }
 0x29b   : > { %v764_v39 = vsel %vm758_vm8, %v718_v17, 0.0 }
 0x29c   : > { %vm759_vm9 = vcmp.lt.s32.totalorder %v757_v38, 31  ;;  %v775_v40 = vmul.f32 %v764_v39, %v764_v39 }
 0x29d   : > { %v765_v41 = vsel %vm759_vm9, %v719_v20, 0.0 }
 0x29e   : > { %v767_v42 = vadd.f32 %v765_v41, %v764_v39  ;;  %v776_v43 = vmul.f32 %v765_v41, %v765_v41 }
 0x2a0   : > { %768 = vadd.xlane.f32.xlu0 %v767_v42  ;;  %v777_v44 = vadd.f32 %v776_v43, %v775_v40 }
 0x2a4   : > { %778 = vadd.xlane.f32.xlu0 %v777_v44 }
 0x329   : > { %v769_v46 = vpop.xlane.xlu0 %768 }
 0x32a   : > { %v770_v47 = vadd.f32 %v769_v46, %v766_v45 }
 0x32c   : > { %772 = vst.msk [vmem:[%s1171_s13] sm:$0xff] %vm771_vm10, %v770_v47 }
 0x32d   : > { %v779_v49 = vpop.xlane.xlu0 %778 }
 0x32e   : > { %v780_v50 = vadd.f32 %v984_v48, %v779_v49 }
 0x330   : > { %985 = vst.msk [vmem:[%s1171_s13 + $0x8] sm:$0xff] %vm771_vm10, %v780_v50 }
 0x331 PF: > { %v997_v51 = vpack.c.bf16 %v719_v20, %v718_v17 }
 0x333   : > { %790 = vst [vmem:[%s1176_s18] sm:$0xff] %v997_v51 }
 0x334 PF: > { %s17_s25 = sadd.s32 1, %s1086_s25   ;;  %s1257_s21 = smov %s1078_s23 }
 0x335   : > { %p14_p12 = scmp.ge.s32.totalorder %s17_s25, 6   ;;  %s1258_s22 = smov %s1082_s24 }
 0x336   : > { %s1259_s23 = smov %s1262_s26  ;;  %s1260_s24 = smov %s1266_s27 }
 0x337   :  { %16 = sbr.rel (!%p14_p12) target bundleno = 3 (0x3), region = 106 }

// kernel: upsampling_block_forward.4
= control target key start
LH: loop header
LB: loop body
LE: loop exit
PB: predicated region body
PF: predicated region fallthrough
CT: control target
= control target key end

     0   :  { %s1051_s18 = smov 0   ;;  %s1053_s19 = smov 0   ;;  %s1169_s0 = inlined_call_operand.vmem [shape: bf16[2,8,896], index: 0, kind: input, shape index: {}, may-alias: {0,1}]   ;;  %s1170_s1 = inlined_call_operand.vmem [shape: bf16[2,8,896], index: 1, kind: input, shape index: {}, may-alias: {0,1}]   ;;  %s1171_s2 = inlined_call_operand.vmem [shape: bf16[5,8,8], index: 2, kind: input, shape index: {}]   ;;  %s1172_s3 = inlined_call_operand.vmem [shape: f32[8,1], index: 3, kind: input, shape index: {}]   ;;  %s1173_s4 = inlined_call_operand.vmem [shape: bf16[2,8,768], index: 4, kind: output, shape index: {0}]   ;;  %s1174_s5 = inlined_call_operand.vmem [shape: f32[2,2,8,1], index: 5, kind: output, shape index: {1}]  }
   0x1   :  { %s1055_s20 = smov 0   ;;  %s1057_s21 = smov 0  }
   0x2   :  { %s1059_s22 = smov 0  }
   0x3 LB: > { %s25_s23 = sadd.s32 1, %s1005_s20  ;;  %s28_s24 = sadd.s32 1, %s1009_s21  ;;  %s1013_s22 = sphi %s1059_s22, %s16_s22   ;;  %s1009_s21 = sphi %s1057_s21, %s1180_s21   ;;  %s1005_s20 = sphi %s1055_s20, %s1179_s20   ;;  %s1001_s19 = sphi %s1053_s19, %s1178_s19   ;;  %s997_s18 = sphi %s1051_s18, %s1177_s18  }
   0x4   : > { %p26_p0 = scmp.ge.s32.totalorder %s25_s23, 3  ;;  %p880_p1 = scmp.ge.s32.totalorder %s1013_s22, 1 }
   0x5   : > { %p242_p2 = scmp.lt.s32.totalorder %s1013_s22, 7 }
   0x6   : > { %s1182_s23 = smov (%p26_p0, %s25_s23), 0  ;;  %s1184_s24 = smov (!%p26_p0, %s28_s24), %s1009_s21 }
   0x7   : > { %p243_p3 = pnand %p880_p1, %p242_p2  ;;  %p30_p4 = scmp.ge.s32.totalorder %s1184_s24, 2 }
   0x8   : > { %s881_s25 = sshll.u32 (!%p243_p3), %s997_s18, 1  ;;  %p302_p5 = scmp.lt.s32.totalorder (!%p243_p3), %s1001_s19, 1 }
   0x9   : > { %s1186_s24 = smov (%p30_p4, %s1184_s24), 0  ;;  %246 = sbr.rel (%p243_p3) target bundleno = 690 (0x2b2), region = 36 }
   0xa   : > { %1175 = sst [smem:[#allocation2_spill]] %s1186_s24  ;;  %s921_s26 = sadd.s32 (!%p243_p3), 2, %s881_s25 }
   0xb   : > { %p330_p6 = scmp.lt.s32.totalorder (!%p243_p3), %s881_s25, 5  ;;  %p319_p7 = scmp.lt.s32.totalorder (!%p243_p3), %s921_s26, 6 }
   0xc   : > { %p304_p8 = scmp.lt.s32.totalorder (!%p243_p3), %s881_s25, 6  ;;  %s1018_s8 = smov (!%p243_p3), 125  }
   0xd   : > { %s1019_s9 = smov (!%p243_p3), 124   ;;  %p905_p9 = scmp.ne.s32.totalorder (!%p243_p3), %s997_s18, 0 }
   0xe   : > { %s1188_s19 = smov (!%p302_p5, %s1001_s19), 1  ;;  %s1190_s26 = smov (!%p319_p7, %s921_s26), 6  ;;  %v1017_v1 = vmov 0   ;;  %vm367_vm0 = vcmask 1043456   ;;  %vm363_vm1 = vcmask 64512   ;;  %v654_v7 = vld [vmem:[%s1172_s3] sm:$0xff] }
   0xf   : > { %s924_s27 = smul.u32 7, %s1188_s19  ;;  %s922_s28 = sshll.u32 %s1188_s19, 4  ;;  %406 = vmatprep.mubr.bf16.mxu0 %v1017_v1  ;;  %456 = vmatprep.mubr.bf16.mxu1 %v1017_v1  ;;  %v350_v6 = vld [vmem:[%s1171_s2] sm:$0xf]  ;;  %vm360_vm2 = vcmask 1039360   ;;  %vm473_vm3 = vcmask 1031168  }
  0x10   : > { %s331_s29 = scalar_select %p330_p6, %s881_s25, 5  ;;  %972 = vset.pattern.permute.xlu0 %v1017_v1  ;;  %v891_v17 = vld [vmem:[%s1171_s2 + $0x4] sm:$0xf]  ;;  %vm536_vm4 = vcmask 1022976   ;;  %v896_v25 = vld [vmem:[%s1171_s2 + $0x8] sm:$0xf] }
  0x11   : > { %s322_s30 = sadd.s32 %s924_s27, %s1190_s26  ;;  %s925_s6 = smul.u32 6, %s1188_s19  ;;  %vm599_vm5 = vcmask 1014784   ;;  %v899_v30 = vld [vmem:[%s1171_s2 + $0xc] sm:$0xf]  ;;  %v902_v35 = vld [vmem:[%s1171_s2 + $0x10] sm:$0xf] }
  0x12   : > { %s884_s7 = sshll.u32 %s322_s30, 2  ;;  %s1087_s10 = scalar_lea.vmem %s1174_s5, %s922_s28 }
  0x13   : > { %s324_s13 = scalar_lea.vmem %s1170_s1, %s884_s7  ;;  %s333_s14 = sadd.s32 %s925_s6, %s331_s29 }
  0x14   : > { %s886_s15 = sshll.u32 %s333_s14, 2  ;;  %v344_v0 = vld [vmem:[%s324_s13] sm:$0xf]  ;;  %s1015_s19 = smov 127  }
  0x15   : > { %s1095_s24 = scalar_lea.vmem %s1173_s4, %s886_s15  ;;  %358 = vrot.lane.b32.xlu1 %v344_v0, %s1015_s19  ;;  %s1192_s25 = smov (!%p304_p8, %s881_s25), 6 }
  0x16   : > { %s307_s26 = sadd.s32 %s924_s27, %s1192_s25  ;;  %s1016_s28 = smov 126  }
  0x17   : > { %s882_s30 = sshll.u32 %s307_s26, 2 }
  0x18   : > { %s309_s6 = scalar_lea.vmem %s1169_s0, %s882_s30 }
  0x19   : > { %471 = vrot.lane.b32.xlu1 %v344_v0, %s1016_s28  ;;  %v343_v2 = vld [vmem:[%s309_s6] sm:$0xff] }
  0x1a   : > { %v889_v3 = vcombine.low %v343_v2, %v343_v2  ;;  %v890_v4 = vcombine.high %v343_v2, %v343_v2 }
  0x1c   : > { %354 = vrot.lane.b32.xlu0 %v889_v3, %s1015_s19  ;;  %v419_v5 = vsel %vm367_vm0, %v889_v3, 0  ;;  %894 = vmatprep.subr.msk.bf16.mxu1 %vm367_vm0, %v890_v4 }
  0x1d   : > { %467 = vrot.lane.b32.xlu1 %v889_v3, %s1016_s28  ;;  %439 = vmatpush1.bf16.msra.mxu1 %v419_v5 }
  0x20   : > { %356 = vrot.lane.b32.xlu0 %v890_v4, %s1015_s19  ;;  %895 = vmatmul.mubr.msk.bf16.vlgmr.msra.gmra.mxu1 %vm363_vm1, %v350_v6 }
  0x21   : > { %532 = vrot.lane.b32.xlu1 %v890_v4, %s1018_s8  ;;  %580 = vmatprep.mubr.bf16.mxu1 %v1017_v1 }
  0x24   : > { %469 = vrot.lane.b32.xlu0 %v890_v4, %s1016_s28 }
  0x25   : > { %593 = vrot.lane.b32.xlu1 %v889_v3, %s1019_s9 }
  0x28   : > { %530 = vrot.lane.b32.xlu0 %v889_v3, %s1018_s8 }
  0x29   : > { %597 = vrot.lane.b32.xlu1 %v344_v0, %s1019_s9 }
  0x2c   : > { %534 = vrot.lane.b32.xlu0 %v344_v0, %s1018_s8 }
  0x30   : > { %595 = vrot.lane.b32.xlu0 %v890_v4, %s1019_s9 }
  0x34   : > { %657 = vperm.xlu0 %972, %v654_v7  }
  0x87   : > { %v359_v8 = vpop.permute.xlu1 %358 }
  0x8b   : > { %v472_v9 = vpop.permute.xlu1 %471 }
  0x8e   : > { %v355_v10 = vpop.permute.xlu0 %354 }
  0x8f   : > { %v468_v11 = vpop.permute.xlu1 %467 }
  0x92   : > { %v357_v12 = vpop.permute.xlu0 %356 }
  0x93   : > { %v362_v13 = vsel %vm360_vm2, %v357_v12, %v359_v8  ;;  %v361_v14 = vsel %vm360_vm2, %v355_v10, %v357_v12  ;;  %v533_v16 = vpop.permute.xlu1 %532 }
  0x94   : > { %892 = vmatprep.subr.msk.bf16.mxu0 %vm367_vm0, %v362_v13  ;;  %v369_v15 = vsel %vm367_vm0, %v361_v14, 0 }
  0x95   : > { %389 = vmatpush1.bf16.msra.mxu0 %v369_v15 }
  0x96   : > { %v470_v18 = vpop.permute.xlu0 %469 }
  0x97   : > { %v474_v19 = vsel %vm473_vm3, %v468_v11, %v470_v18  ;;  %v475_v20 = vsel %vm473_vm3, %v470_v18, %v472_v9  ;;  %v594_v23 = vpop.permute.xlu1 %593 }
  0x98   : > { %v480_v21 = vsel %vm367_vm0, %v474_v19, 0  ;;  %893 = vmatmul.mubr.msk.bf16.vlgmr.msra.gmra.mxu0 %vm363_vm1, %v891_v17  ;;  %897 = vmatprep.subr.msk.bf16.mxu0 %vm367_vm0, %v475_v20 }
  0x99   : > { %500 = vmatpush1.bf16.msra.mxu0 %v480_v21  ;;  %517 = vmatprep.mubr.bf16.mxu0 %v1017_v1 }
  0x9a   : > { %v531_v22 = vpop.permute.xlu0 %530 }
  0x9b   : > { %v537_v24 = vsel %vm536_vm4, %v531_v22, %v533_v16  ;;  %v598_v29 = vpop.permute.xlu1 %597 }
  0x9c   : > { %v543_v28 = vsel %vm367_vm0, %v537_v24, 0 }
  0x9e   : > { %v535_v26 = vpop.permute.xlu0 %534 }
  0x9f   : > { %v538_v27 = vsel %vm536_vm4, %v533_v16, %v535_v26 }
  0xa0   : > { %898 = vmatmul.mubr.msk.bf16.vlgmr.msra.gmra.mxu0 %vm363_vm1, %v896_v25  ;;  %900 = vmatprep.subr.msk.bf16.mxu1 %vm367_vm0, %v538_v27 }
  0xa1   : > { %563 = vmatpush1.bf16.msra.mxu1 %v543_v28  ;;  %643 = vmatprep.mubr.bf16.mxu0 %v1017_v1 }
  0xa2   : > { %v596_v31 = vpop.permute.xlu0 %595 }
  0xa3   : > { %v600_v32 = vsel %vm599_vm5, %v594_v23, %v596_v31  ;;  %v601_v33 = vsel %vm599_vm5, %v596_v31, %v598_v29 }
  0xa4   : > { %v606_v34 = vsel %vm367_vm0, %v600_v32, 0  ;;  %901 = vmatmul.mubr.msk.bf16.vlgmr.msra.gmra.mxu1 %vm363_vm1, %v899_v30  ;;  %903 = vmatprep.subr.msk.bf16.mxu0 %vm367_vm0, %v601_v33 }
  0xa5   : > { %626 = vmatpush1.bf16.msra.mxu0 %v606_v34 }
  0xa8   : > { %904 = vmatmul.mubr.msk.bf16.vlgmr.msra.gmra.mxu0 %vm363_vm1, %v902_v35 }
  0xaf   : > { %v658_v55 = vpop.permute.xlu0 %657 }
  0xe0   : > { %v458_v36 = vpop.f32.mrf.mxu1 }
  0xe2   : > { %v460_v37 = vpop.f32.mrf.mxu1 }
  0xe4   : > { %v462_v38 = vpop.f32.mrf.mxu1 }
  0xe6   : > { %v463_v39 = vpop.f32.mrf.mxu1 }
 0x158   : > { %v408_v40 = vpop.f32.mrf.mxu0 }
 0x159   : > { %v459_v46 = vadd.f32 %v458_v36, %v408_v40 }
 0x15a   : > { %v410_v41 = vpop.f32.mrf.mxu0 }
 0x15b   : > { %v461_v49 = vadd.f32 %v460_v37, %v410_v41 }
 0x15c   : > { %v412_v42 = vpop.f32.mrf.mxu0 }
 0x15e   : > { %v413_v43 = vpop.f32.mrf.mxu0 }
 0x160   : > { %v519_v44 = vpop.f32.mrf.mxu0 }
 0x161   : > { %v526_v50 = vadd.f32 %v519_v44, %v459_v46 }
 0x162   : > { %v521_v45 = vpop.f32.mrf.mxu0 }
 0x163   : > { %v527_v53 = vadd.f32 %v521_v45, %v461_v49 }
 0x164   : > { %v523_v47 = vpop.f32.mrf.mxu0  ;;  %v582_v48 = vpop.f32.mrf.mxu1 }
 0x165   : > { %v589_v54 = vadd.f32 %v582_v48, %v526_v50 }
 0x166   : > { %v524_v51 = vpop.f32.mrf.mxu0  ;;  %v584_v52 = vpop.f32.mrf.mxu1 }
 0x167   : > { %v590_v58 = vadd.f32 %v584_v52, %v527_v53 }
 0x168   : > { %v645_v56 = vpop.f32.mrf.mxu0  ;;  %v586_v57 = vpop.f32.mrf.mxu1 }
 0x169   : > { %v652_v59 = vadd.f32 %v645_v56, %v589_v54 }
 0x16a   : > { %v647_v60 = vpop.f32.mrf.mxu0  ;;  %v587_v61 = vpop.f32.mrf.mxu1  ;;  %665 = sbr.rel (%p905_p9) target bundleno = 369 (0x171), region = 40 }
 0x16b   : > { %v653_v62 = vadd.f32 %v647_v60, %v590_v58  ;;  %v660_v63 = vadd.f32 %v658_v55, %v652_v59 }
 0x16c   : > { %v649_v0 = vpop.f32.mrf.mxu0 }
 0x16d   : > { %v661_v1 = vadd.f32 %v658_v55, %v653_v62 }
 0x16e   : > { %v650_v2 = vpop.f32.mrf.mxu0 }
 0x16f   : > { %vm666_vm6 = vcmask 7168   ;;  %v1020_v3 = vmov 0.0  }
 0x170   : > { %667 = vst.msk [vmem:[%s1087_s10] sm:$0xff] %vm666_vm6, %v1020_v3  ;;  %668 = vst.msk [vmem:[%s1087_s10 + $0x8] sm:$0xff] %vm666_vm6, %v1020_v3 }
 0x171 PF: > { %p906_p10 = scmp.ge.s32.totalorder %s997_s18, 0 }
 0x173   : > { %672 = sbr.rel (%p906_p10) target bundleno = 523 (0x20b), region = 44 }
 0x178   : > { %v674_v4 = vadd.f32 %v661_v1, %v660_v63  ;;  %v682_v5 = vmul.f32 %v660_v63, %v660_v63  ;;  %v683_v6 = vmul.f32 %v661_v1, %v661_v1  ;;  %v673_v8 = vld [vmem:[%s1087_s10] sm:$0xff]  ;;  %vm678_vm7 = vcmask 7168   ;;  %v907_v11 = vld [vmem:[%s1087_s10 + $0x8] sm:$0xff] }
 0x17a   : > { %675 = vadd.xlane.f32.xlu0 %v674_v4  ;;  %v684_v7 = vadd.f32 %v683_v6, %v682_v5 }
 0x17e   : > { %685 = vadd.xlane.f32.xlu0 %v684_v7 }
 0x203   : > { %v676_v9 = vpop.xlane.xlu0 %675 }
 0x204   : > { %v677_v10 = vadd.f32 %v676_v9, %v673_v8 }
 0x206   : > { %679 = vst.msk [vmem:[%s1087_s10] sm:$0xff] %vm678_vm7, %v677_v10 }
 0x207   : > { %v686_v12 = vpop.xlane.xlu0 %685 }
 0x208   : > { %v687_v13 = vadd.f32 %v907_v11, %v686_v12 }
 0x20a   : > { %908 = vst.msk [vmem:[%s1087_s10 + $0x8] sm:$0xff] %vm678_vm7, %v687_v13 }
 0x20b PF: > { %p909_p11 = scmp.lt.s32.totalorder %s997_s18, 0 }
 0x20c   : > { %s910_s28 = sshll.u32 (!%p909_p11), %s997_s18, 8 }
 0x20d   : > { %692 = sbr.rel (%p909_p11) target bundleno = 687 (0x2af), region = 48 }
 0x212   : > { %v693_v14 = vlaneseq  ;;  %v697_v15 = vstv %s910_s28  ;;  %v708_v26 = vld [vmem:[%s1087_s10] sm:$0xff]  ;;  %vm713_vm10 = vcmask 7168   ;;  %v911_v29 = vld [vmem:[%s1087_s10 + $0x8] sm:$0xff] }
 0x214   : > { %v694_v16 = vand.u32 127, %v693_v14 }
 0x216   : > { %v695_v17 = vadd.s32 128, %v694_v16  ;;  %v698_v18 = vadd.s32 %v697_v15, %v694_v16 }
 0x218   : > { %v699_v19 = vadd.s32 %v697_v15, %v695_v17  ;;  %vm700_vm8 = vcmp.lt.s32.totalorder %v698_v18, 35 }
 0x219   : > { %v706_v20 = vsel %vm700_vm8, %v660_v63, 0.0 }
 0x21a   : > { %vm701_vm9 = vcmp.lt.s32.totalorder %v699_v19, 35  ;;  %v717_v21 = vmul.f32 %v706_v20, %v706_v20 }
 0x21b   : > { %v707_v22 = vsel %vm701_vm9, %v661_v1, 0.0 }
 0x21c   : > { %v709_v23 = vadd.f32 %v707_v22, %v706_v20  ;;  %v718_v24 = vmul.f32 %v707_v22, %v707_v22 }
 0x21e   : > { %710 = vadd.xlane.f32.xlu0 %v709_v23  ;;  %v719_v25 = vadd.f32 %v718_v24, %v717_v21 }
 0x222   : > { %720 = vadd.xlane.f32.xlu0 %v719_v25 }
 0x2a7   : > { %v711_v27 = vpop.xlane.xlu0 %710 }
 0x2a8   : > { %v712_v28 = vadd.f32 %v711_v27, %v708_v26 }
 0x2aa   : > { %714 = vst.msk [vmem:[%s1087_s10] sm:$0xff] %vm713_vm10, %v712_v28 }
 0x2ab   : > { %v721_v30 = vpop.xlane.xlu0 %720 }
 0x2ac   : > { %v722_v31 = vadd.f32 %v911_v29, %v721_v30 }
 0x2ae   : > { %912 = vst.msk [vmem:[%s1087_s10 + $0x8] sm:$0xff] %vm713_vm10, %v722_v31 }
 0x2af PF: > { %v923_v32 = vpack.c.bf16 %v661_v1, %v660_v63 }
 0x2b1   : > { %732 = vst [vmem:[%s1095_s24] sm:$0xff] %v923_v32 }
 0x2b2 PF: > { %s16_s22 = sadd.s32 1, %s1013_s22   ;;  %s1176_s7 = sld [smem:[#allocation2_spill]] }
 0x2b3   : > { %p13_p12 = scmp.ge.s32.totalorder %s16_s22, 8   ;;  %s1177_s18 = smov %s1005_s20 }
 0x2b4   : > { %s1178_s19 = smov %s1009_s21  ;;  %s1179_s20 = smov %s1182_s23 }
 0x2b5   :  { %15 = sbr.rel (!%p13_p12) target bundleno = 3 (0x3), region = 99 }
 0x2b8   : > { %s1180_s21 = smov %s1176_s7 }

// kernel: upsampling_block_forward.6
= control target key start
LH: loop header
LB: loop body
LE: loop exit
PB: predicated region body
PF: predicated region fallthrough
CT: control target
= control target key end

     0   :  { %s1652_s30 = smov 0   ;;  %s1654_s10 = smov 0   ;;  %s1837_s0 = inlined_call_operand.vmem [shape: bf16[2,8,384], index: 0, kind: input, shape index: {}, may-alias: {0,1}]   ;;  %s1838_s1 = inlined_call_operand.vmem [shape: bf16[2,8,384], index: 1, kind: input, shape index: {}, may-alias: {0,1}]   ;;  %s1839_s2 = inlined_call_operand.vmem [shape: bf16[2,8,512], index: 2, kind: input, shape index: {}, may-alias: {2,3}]   ;;  %s1840_s3 = inlined_call_operand.vmem [shape: bf16[2,8,512], index: 3, kind: input, shape index: {}, may-alias: {2,3}]   ;;  %s1841_s4 = inlined_call_operand.vmem [shape: f32[2,2,8,1], index: 4, kind: input, shape index: {}]   ;;  %s1842_s5 = inlined_call_operand.vmem [shape: bf16[5,8,8], index: 5, kind: input, shape index: {}]   ;;  %s1843_s6 = inlined_call_operand.vmem [shape: bf16[5,8,8], index: 6, kind: input, shape index: {}]   ;;  %s1844_s7 = inlined_call_operand.vmem [shape: f32[8,1], index: 7, kind: input, shape index: {}]   ;;  %s1845_s8 = inlined_call_operand.vmem [shape: bf16[2,8,256], index: 8, kind: output, shape index: {0}]   ;;  %s1846_s9 = inlined_call_operand.vmem [shape: f32[2,2,8,1], index: 9, kind: output, shape index: {1}]  }
   0x1   :  { %s1656_s11 = smov 0  }
   0x2 LB: > { %s32_s12 = sadd.s32 1, %s1590_s10  ;;  %p1472_p0 = scmp.ge.s32.totalorder %s1594_s11, 1  ;;  %s1594_s11 = sphi %s1656_s11, %s20_s11   ;;  %s1590_s10 = sphi %s1654_s10, %s1848_s10   ;;  %s1586_s30 = sphi %s1652_s30, %s1847_s30  }
   0x3   : > { %p34_p1 = scmp.ge.s32.totalorder %s32_s12, 2  ;;  %p392_p2 = scmp.lt.s32.totalorder %s1594_s11, 3 }
   0x5   : > { %s1850_s12 = smov (%p34_p1, %s32_s12), 0  ;;  %p393_p3 = pnand %p1472_p0, %p392_p2 }
   0x6   : > { %p484_p4 = scmp.lt.s32.totalorder (!%p393_p3), %s1586_s30, 1  ;;  %s1597_s25 = smov (!%p393_p3), 127  }
   0x7   : > { %396 = sbr.rel (%p393_p3) target bundleno = 631 (0x277), region = 52  ;;  %s1598_s26 = smov (!%p393_p3), 126  }
   0x8   : > { %s1599_s29 = smov (!%p393_p3), 125   ;;  %s1600_s14 = smov (!%p393_p3), 124  }
   0xc   : > { %v1596_v0 = vmov 0   ;;  %s1852_s30 = smov (!%p484_p4, %s1586_s30), 1  ;;  %vm576_vm0 = vcmask 1043456   ;;  %v559_v8 = vld [vmem:[%s1842_s5] sm:$0xf]  ;;  %vm572_vm1 = vcmask 64512  }
   0xd   : > { %1567 = vset.pattern.permute.xlu0 %v1596_v0  ;;  %665 = vmatprep.mubr.bf16.mxu1 %v1596_v0  ;;  %s1676_s13 = sshll.u32 %s1852_s30, 4  ;;  %s1534_s17 = smul.u32 12, %s1852_s30  ;;  %vm569_vm2 = vcmask 1039360   ;;  %vm682_vm3 = vcmask 1031168   ;;  %v1487_v42 = vld [vmem:[%s1842_s5 + $0x4] sm:$0xf] }
   0xe   : > { %615 = vmatprep.mubr.bf16.mxu0 %v1596_v0  ;;  %s535_s16 = scalar_lea.vmem %s1841_s4, %s1676_s13  ;;  %s1528_s18 = sadd.s32 8, %s1676_s13  ;;  %vm745_vm4 = vcmask 1022976   ;;  %v1492_v50 = vld [vmem:[%s1842_s5 + $0x8] sm:$0xf]  ;;  %vm808_vm5 = vcmask 1014784   ;;  %v1203_v59 = vld [vmem:[%s1844_s7] sm:$0xff] }
   0xf   : > { %v872_v1 = vld [vmem:[%s535_s16] sm:$0xff]  ;;  %v873_v2 = vld [vmem:[%s535_s16 + $0x8] sm:$0xff]  ;;  %s491_s20 = scalar_lea.vmem %s1837_s0, %s1534_s17  ;;  %s1525_s21 = sadd.s32 8, %s1534_s17  ;;  %v1498_v58 = vld [vmem:[%s1842_s5 + $0x10] sm:$0xf]  ;;  %vm1215_vm6 = vcmask 7168  }
  0x10   : > { %879 = vperm.xlu0 %1567, %v872_v1   ;;  %v552_v3 = vld [vmem:[%s491_s20] sm:$0xff]  ;;  %s506_s24 = scalar_lea.vmem %s1838_s1, %s1525_s21  ;;  %s517_s17 = scalar_lea.vmem %s1839_s2, %s1676_s13  ;;  %v1495_v53 = vld [vmem:[%s1842_s5 + $0xc] sm:$0xf] }
  0x11   : > { %v1485_v4 = vcombine.low %v552_v3, %v552_v3  ;;  %v1486_v5 = vcombine.high %v552_v3, %v552_v3  ;;  %v553_v6 = vld [vmem:[%s506_s24] sm:$0xf]  ;;  %s528_s21 = scalar_lea.vmem %s1840_s3, %s1528_s18  ;;  %s1812_s28 = scalar_lea.vmem %s1846_s9, %s1676_s13 }
  0x12   : > { %v863_v9 = vld [vmem:[%s517_s17] sm:$0xff]  ;;  %s1530_s13 = sshll.u32 %s1852_s30, 3 }
  0x13   : > { %563 = vrot.lane.b32.xlu1 %v1485_v4, %s1597_s25  ;;  %1490 = vmatprep.subr.msk.bf16.mxu1 %vm576_vm0, %v1486_v5  ;;  %v628_v7 = vsel %vm576_vm0, %v1485_v4, 0  ;;  %v1501_v10 = vcombine.low %v863_v9, %v863_v9  ;;  %v1502_v11 = vcombine.high %v863_v9, %v863_v9  ;;  %v864_v12 = vld [vmem:[%s528_s21] sm:$0xf]  ;;  %v1505_v9 = vld [vmem:[%s1843_s6 + $0x4] sm:$0xf] }
  0x14   : > { %887 = vperm.xlu0 %1567, %v873_v2   ;;  %648 = vmatpush1.bf16.msra.mxu1 %v628_v7  ;;  %v876_v16 = vunpack.c.l.bf16 %v864_v12  ;;  %v899_v60 = vld [vmem:[%s1843_s6] sm:$0xf] }
  0x15   : > { %v874_v14 = vunpack.c.l.bf16 %v1501_v10  ;;  %v875_v15 = vunpack.c.l.bf16 %v1502_v11 }
  0x17   : > { %565 = vrot.lane.b32.xlu1 %v1486_v5, %s1597_s25  ;;  %1491 = vmatmul.mubr.msk.bf16.vlgmr.msra.gmra.mxu1 %vm572_vm1, %v559_v8 }
  0x18   : > { %567 = vrot.lane.b32.xlu0 %v553_v6, %s1597_s25  ;;  %789 = vmatprep.mubr.bf16.mxu1 %v1596_v0 }
  0x1b   : > { %676 = vrot.lane.b32.xlu1 %v1485_v4, %s1598_s26 }
  0x1c   : > { %678 = vrot.lane.b32.xlu0 %v1486_v5, %s1598_s26 }
  0x1f   : > { %680 = vrot.lane.b32.xlu1 %v553_v6, %s1598_s26 }
  0x20   : > { %739 = vrot.lane.b32.xlu0 %v1485_v4, %s1599_s29 }
  0x23   : > { %741 = vrot.lane.b32.xlu1 %v1486_v5, %s1599_s29 }
  0x24   : > { %743 = vrot.lane.b32.xlu0 %v553_v6, %s1599_s29 }
  0x27   : > { %802 = vrot.lane.b32.xlu1 %v1485_v4, %s1600_s14 }
  0x28   : > { %804 = vrot.lane.b32.xlu0 %v1486_v5, %s1600_s14 }
  0x2b   : > { %806 = vrot.lane.b32.xlu1 %v553_v6, %s1600_s14 }
  0x85   : > { %v564_v13 = vpop.permute.xlu1 %563 }
  0x89   : > { %v566_v18 = vpop.permute.xlu1 %565 }
  0x8a   : > { %v570_v27 = vsel %vm569_vm2, %v564_v13, %v566_v18 }
  0x8b   : > { %v880_v17 = vpop.permute.xlu0 %879  ;;  %v578_v32 = vsel %vm576_vm0, %v570_v27, 0 }
  0x8c   : > { %v882_v19 = vmul.f32 %v880_v17, %v874_v14  ;;  %v883_v20 = vmul.f32 %v880_v17, %v875_v15  ;;  %v884_v21 = vmul.f32 %v880_v17, %v876_v16  ;;  %v1508_v15 = vld [vmem:[%s1843_s6 + $0x8] sm:$0xf] }
  0x8d   : > { %v677_v23 = vpop.permute.xlu1 %676 }
  0x8f   : > { %v888_v22 = vpop.permute.xlu0 %887 }
  0x90   : > { %v890_v24 = vadd.f32 %v888_v22, %v882_v19  ;;  %v891_v25 = vadd.f32 %v888_v22, %v883_v20  ;;  %v892_v26 = vadd.f32 %v888_v22, %v884_v21 }
  0x91   : > { %v681_v31 = vpop.permute.xlu1 %680 }
  0x92   : > { %v893_v28 = vmax.f32 %v890_v24, 0.0  ;;  %v894_v29 = vmax.f32 %v891_v25, 0.0  ;;  %v895_v33 = vmax.f32 %v892_v26, 0.0 }
  0x93   : > { %v568_v30 = vpop.permute.xlu0 %567 }
  0x94   : > { %v896_v34 = vpack.c.bf16 %v893_v28, %v893_v28  ;;  %v897_v35 = vpack.c.bf16 %v894_v29, %v894_v29  ;;  %v571_v36 = vsel %vm569_vm2, %v566_v18, %v568_v30  ;;  %v898_v39 = vpack.c.bf16 %v895_v33, %v895_v33  ;;  %v1514_v28 = vld [vmem:[%s1843_s6 + $0x10] sm:$0xf] }
  0x95   : > { %1488 = vmatprep.subr.msk.bf16.mxu0 %vm576_vm0, %v571_v36  ;;  %v742_v38 = vpop.permute.xlu1 %741 }
  0x96   : > { %957 = vrot.lane.b32.xlu0 %v896_v34, %s1597_s25  ;;  %959 = vrot.lane.b32.xlu1 %v897_v35, %s1597_s25  ;;  %v904_v57 = vsel %vm576_vm0, %v896_v34, 0 }
  0x97   : > { %v679_v37 = vpop.permute.xlu0 %678  ;;  %598 = vmatpush1.bf16.msra.mxu0 %v578_v32 }
  0x98   : > { %v683_v40 = vsel %vm682_vm3, %v677_v23, %v679_v37  ;;  %v684_v41 = vsel %vm682_vm3, %v679_v37, %v681_v31  ;;  %v1511_v23 = vld [vmem:[%s1843_s6 + $0xc] sm:$0xf] }
  0x99   : > { %v689_v43 = vsel %vm576_vm0, %v683_v40, 0  ;;  %1493 = vmatprep.subr.msk.bf16.mxu0 %vm576_vm0, %v684_v41  ;;  %v803_v45 = vpop.permute.xlu1 %802 }
  0x9a   : > { %961 = vrot.lane.b32.xlu0 %v898_v39, %s1597_s25  ;;  %1019 = vrot.lane.b32.xlu1 %v896_v34, %s1598_s26 }
  0x9b   : > { %v740_v44 = vpop.permute.xlu0 %739  ;;  %1489 = vmatmul.mubr.msk.bf16.vlgmr.msra.gmra.mxu0 %vm572_vm1, %v1487_v42 }
  0x9c   : > { %709 = vmatpush1.bf16.msra.mxu0 %v689_v43  ;;  %726 = vmatprep.mubr.bf16.mxu0 %v1596_v0  ;;  %v746_v46 = vsel %vm745_vm4, %v740_v44, %v742_v38 }
  0x9d   : > { %v752_v49 = vsel %vm576_vm0, %v746_v46, 0  ;;  %v807_v51 = vpop.permute.xlu1 %806 }
  0x9e   : > { %1021 = vrot.lane.b32.xlu0 %v897_v35, %s1598_s26  ;;  %1023 = vrot.lane.b32.xlu1 %v898_v39, %s1598_s26 }
  0x9f   : > { %v744_v47 = vpop.permute.xlu0 %743 }
  0xa0   : > { %v747_v48 = vsel %vm745_vm4, %v742_v38, %v744_v47 }
  0xa1   : > { %1496 = vmatprep.subr.msk.bf16.mxu1 %vm576_vm0, %v747_v48  ;;  %v1601_v48 = vmov 0.0  }
  0xa2   : > { %1081 = vrot.lane.b32.xlu0 %v896_v34, %s1599_s29  ;;  %1083 = vrot.lane.b32.xlu1 %v897_v35, %s1599_s29  ;;  %1216 = vst.msk [vmem:[%s1812_s28] sm:$0xff] %vm1215_vm6, %v1601_v48  ;;  %1217 = vst.msk [vmem:[%s1812_s28 + $0x8] sm:$0xff] %vm1215_vm6, %v1601_v48 }
  0xa3   : > { %772 = vmatpush1.bf16.msra.mxu1 %v752_v49  ;;  %v805_v52 = vpop.permute.xlu0 %804  ;;  %1494 = vmatmul.mubr.msk.bf16.vlgmr.msra.gmra.mxu0 %vm572_vm1, %v1492_v50 }
  0xa4   : > { %1503 = vmatprep.subr.msk.bf16.mxu1 %vm576_vm0, %v897_v35  ;;  %v809_v54 = vsel %vm808_vm5, %v803_v45, %v805_v52  ;;  %v810_v55 = vsel %vm808_vm5, %v805_v52, %v807_v51  ;;  %852 = vmatprep.mubr.bf16.mxu0 %v1596_v0 }
  0xa5   : > { %v815_v56 = vsel %vm576_vm0, %v809_v54, 0  ;;  %1499 = vmatprep.subr.msk.bf16.mxu0 %vm576_vm0, %v810_v55 }
  0xa6   : > { %1085 = vrot.lane.b32.xlu0 %v898_v39, %s1599_s29  ;;  %1143 = vrot.lane.b32.xlu1 %v896_v34, %s1600_s14  ;;  %s544_s29 = scalar_lea.vmem %s1845_s8, %s1530_s13 }
  0xa7   : > { %1497 = vmatmul.mubr.msk.bf16.vlgmr.msra.gmra.mxu1 %vm572_vm1, %v1495_v53  ;;  %835 = vmatpush1.bf16.msra.mxu0 %v815_v56 }
  0xa8   : > { %924 = vmatpush1.bf16.msra.mxu1 %v904_v57  ;;  %941 = vmatprep.mubr.bf16.mxu1 %v1596_v0 }
  0xaa   : > { %1145 = vrot.lane.b32.xlu0 %v897_v35, %s1600_s14  ;;  %1147 = vrot.lane.b32.xlu1 %v898_v39, %s1600_s14 }
  0xab   : > { %1500 = vmatmul.mubr.msk.bf16.vlgmr.msra.gmra.mxu0 %vm572_vm1, %v1498_v58 }
  0xac   : > { %1006 = vmatprep.mubr.bf16.mxu0 %v1596_v0 }
  0xae   : > { %1206 = vperm.xlu0 %1567, %v1203_v59  }
  0xaf   : > { %1504 = vmatmul.mubr.msk.bf16.vlgmr.msra.gmra.mxu1 %vm572_vm1, %v899_v60 }
  0xb0   : > { %1068 = vmatprep.mubr.bf16.mxu1 %v1596_v0 }
  0xd7   : > { %v667_v61 = vpop.f32.mrf.mxu1 }
  0xd9   : > { %v669_v62 = vpop.f32.mrf.mxu1 }
  0xdb   : > { %v671_v63 = vpop.f32.mrf.mxu1 }
  0xdd   : > { %v672_v1 = vpop.f32.mrf.mxu1 }
 0x108   : > { %v958_v2 = vpop.permute.xlu0 %957  ;;  %v960_v3 = vpop.permute.xlu1 %959 }
 0x109   : > { %v963_v4 = vsel %vm569_vm2, %v958_v2, %v960_v3 }
 0x10a   : > { %v969_v8 = vsel %vm576_vm0, %v963_v4, 0 }
 0x10c   : > { %v962_v5 = vpop.permute.xlu0 %961  ;;  %v1020_v6 = vpop.permute.xlu1 %1019 }
 0x10d   : > { %v964_v7 = vsel %vm569_vm2, %v960_v3, %v962_v5  ;;  %v1242_v5 = vlaneseq }
 0x10e   : > { %1506 = vmatprep.subr.msk.bf16.mxu0 %vm576_vm0, %v964_v7 }
 0x10f   : > { %989 = vmatpush1.bf16.msra.mxu0 %v969_v8 }
 0x110   : > { %v1022_v10 = vpop.permute.xlu0 %1021  ;;  %v1024_v11 = vpop.permute.xlu1 %1023 }
 0x111   : > { %v1025_v12 = vsel %vm682_vm3, %v1020_v6, %v1022_v10  ;;  %v1026_v13 = vsel %vm682_vm3, %v1022_v10, %v1024_v11  ;;  %v1243_v11 = vand.u32 127, %v1242_v5 }
 0x112   : > { %v1031_v14 = vsel %vm576_vm0, %v1025_v12, 0  ;;  %1507 = vmatmul.mubr.msk.bf16.vlgmr.msra.gmra.mxu0 %vm572_vm1, %v1505_v9  ;;  %1509 = vmatprep.subr.msk.bf16.mxu1 %vm576_vm0, %v1026_v13 }
 0x113   : > { %1051 = vmatpush1.bf16.msra.mxu1 %v1031_v14  ;;  %1130 = vmatprep.mubr.bf16.mxu0 %v1596_v0  ;;  %vm1249_vm7 = vcmp.lt.s32.totalorder %v1243_v11, 27 }
 0x114   : > { %v1082_v16 = vpop.permute.xlu0 %1081  ;;  %v1084_v17 = vpop.permute.xlu1 %1083 }
 0x115   : > { %v1087_v18 = vsel %vm745_vm4, %v1082_v16, %v1084_v17 }
 0x116   : > { %1510 = vmatmul.mubr.msk.bf16.vlgmr.msra.gmra.mxu1 %vm572_vm1, %v1508_v15  ;;  %v1093_v22 = vsel %vm576_vm0, %v1087_v18, 0 }
 0x117   : > { %1192 = vmatprep.mubr.bf16.mxu1 %v1596_v0 }
 0x118   : > { %v1086_v19 = vpop.permute.xlu0 %1085  ;;  %v1144_v20 = vpop.permute.xlu1 %1143 }
 0x119   : > { %v1088_v21 = vsel %vm745_vm4, %v1084_v17, %v1086_v19 }
 0x11a   : > { %1512 = vmatprep.subr.msk.bf16.mxu0 %vm576_vm0, %v1088_v21 }
 0x11b   : > { %1113 = vmatpush1.bf16.msra.mxu0 %v1093_v22 }
 0x11c   : > { %v1146_v24 = vpop.permute.xlu0 %1145  ;;  %v1148_v25 = vpop.permute.xlu1 %1147 }
 0x11d   : > { %v1149_v26 = vsel %vm808_vm5, %v1144_v20, %v1146_v24  ;;  %v1150_v27 = vsel %vm808_vm5, %v1146_v24, %v1148_v25 }
 0x11e   : > { %v1155_v0 = vsel %vm576_vm0, %v1149_v26, 0  ;;  %1513 = vmatmul.mubr.msk.bf16.vlgmr.msra.gmra.mxu0 %vm572_vm1, %v1511_v23  ;;  %1515 = vmatprep.subr.msk.bf16.mxu1 %vm576_vm0, %v1150_v27 }
 0x11f   : > { %1175 = vmatpush1.bf16.msra.mxu1 %v1155_v0 }
 0x122   : > { %1516 = vmatmul.mubr.msk.bf16.vlgmr.msra.gmra.mxu1 %vm572_vm1, %v1514_v28  ;;  %v1257_v28 = vld [vmem:[%s1812_s28] sm:$0xff] }
 0x129   : > { %v1207_v16 = vpop.permute.xlu0 %1206 }
 0x15b   : > { %v617_v29 = vpop.f32.mrf.mxu0 }
 0x15c   : > { %v668_v32 = vadd.f32 %v667_v61, %v617_v29 }
 0x15d   : > { %v619_v30 = vpop.f32.mrf.mxu0 }
 0x15e   : > { %v670_v34 = vadd.f32 %v669_v62, %v619_v30  ;;  %v1519_v30 = vld [vmem:[%s1812_s28 + $0x8] sm:$0xff] }
 0x15f   : > { %v621_v31 = vpop.f32.mrf.mxu0 }
 0x161   : > { %v622_v33 = vpop.f32.mrf.mxu0 }
 0x163   : > { %v728_v35 = vpop.f32.mrf.mxu0 }
 0x164   : > { %v735_v36 = vadd.f32 %v728_v35, %v668_v32 }
 0x165   : > { %v730_v37 = vpop.f32.mrf.mxu0 }
 0x166   : > { %v736_v38 = vadd.f32 %v730_v37, %v670_v34 }
 0x167   : > { %v791_v39 = vpop.f32.mrf.mxu1  ;;  %v732_v40 = vpop.f32.mrf.mxu0 }
 0x168   : > { %v798_v41 = vadd.f32 %v791_v39, %v735_v36 }
 0x169   : > { %v793_v42 = vpop.f32.mrf.mxu1  ;;  %v733_v43 = vpop.f32.mrf.mxu0 }
 0x16a   : > { %v799_v44 = vadd.f32 %v793_v42, %v736_v38 }
 0x16b   : > { %v795_v45 = vpop.f32.mrf.mxu1  ;;  %v854_v46 = vpop.f32.mrf.mxu0 }
 0x16c   : > { %v861_v47 = vadd.f32 %v854_v46, %v798_v41 }
 0x16d   : > { %v796_v49 = vpop.f32.mrf.mxu1  ;;  %v856_v50 = vpop.f32.mrf.mxu0 }
 0x16e   : > { %v862_v51 = vadd.f32 %v856_v50, %v799_v44 }
 0x16f   : > { %v943_v52 = vpop.f32.mrf.mxu1  ;;  %v858_v53 = vpop.f32.mrf.mxu0 }
 0x170   : > { %v950_v54 = vadd.f32 %v943_v52, %v861_v47 }
 0x171   : > { %v945_v55 = vpop.f32.mrf.mxu1  ;;  %v859_v56 = vpop.f32.mrf.mxu0 }
 0x172   : > { %v951_v57 = vadd.f32 %v945_v55, %v862_v51 }
 0x173   : > { %v947_v58 = vpop.f32.mrf.mxu1 }
 0x175   : > { %v948_v59 = vpop.f32.mrf.mxu1 }
 0x1d2   : > { %v1008_v60 = vpop.f32.mrf.mxu0 }
 0x1d3   : > { %v1015_v6 = vadd.f32 %v1008_v60, %v950_v54 }
 0x1d4   : > { %v1010_v61 = vpop.f32.mrf.mxu0 }
 0x1d5   : > { %v1016_v8 = vadd.f32 %v1010_v61, %v951_v57 }
 0x1d6   : > { %v1070_v62 = vpop.f32.mrf.mxu1  ;;  %v1012_v63 = vpop.f32.mrf.mxu0 }
 0x1d7   : > { %v1077_v9 = vadd.f32 %v1070_v62, %v1015_v6 }
 0x1d8   : > { %v1072_v1 = vpop.f32.mrf.mxu1  ;;  %v1013_v2 = vpop.f32.mrf.mxu0 }
 0x1d9   : > { %v1078_v12 = vadd.f32 %v1072_v1, %v1016_v8 }
 0x1da   : > { %v1074_v3 = vpop.f32.mrf.mxu1 }
 0x1dc   : > { %v1075_v4 = vpop.f32.mrf.mxu1 }
 0x1de   : > { %v1132_v7 = vpop.f32.mrf.mxu0 }
 0x1df   : > { %v1139_v13 = vadd.f32 %v1132_v7, %v1077_v9 }
 0x1e0   : > { %v1134_v10 = vpop.f32.mrf.mxu0 }
 0x1e1   : > { %v1140_v17 = vadd.f32 %v1134_v10, %v1078_v12 }
 0x1e2   : > { %v1194_v14 = vpop.f32.mrf.mxu1  ;;  %v1136_v15 = vpop.f32.mrf.mxu0 }
 0x1e3   : > { %v1201_v18 = vadd.f32 %v1194_v14, %v1139_v13 }
 0x1e4   : > { %v1196_v19 = vpop.f32.mrf.mxu1  ;;  %v1137_v20 = vpop.f32.mrf.mxu0 }
 0x1e5   : > { %v1202_v21 = vadd.f32 %v1196_v19, %v1140_v17  ;;  %v1209_v22 = vadd.f32 %v1207_v16, %v1201_v18 }
 0x1e6   : > { %v1198_v23 = vpop.f32.mrf.mxu1 }
 0x1e7   : > { %v1210_v24 = vadd.f32 %v1207_v16, %v1202_v21  ;;  %v1255_v25 = vsel %vm1249_vm7, %v1209_v22, 0.0 }
 0x1e8   : > { %v1199_v26 = vpop.f32.mrf.mxu1  ;;  %1259 = vadd.xlane.f32.xlu1 %v1255_v25  ;;  %v1266_v27 = vmul.f32 %v1255_v25, %v1255_v25 }
 0x1e9   : > { %v1532_v0 = vpack.c.bf16 %v1210_v24, %v1209_v22 }
 0x1ea   : > { %1269 = vadd.xlane.f32.xlu0 %v1266_v27 }
 0x1eb   : > { %1281 = vst [vmem:[%s544_s29] sm:$0xff] %v1532_v0 }
 0x271   : > { %v1260_v29 = vpop.xlane.xlu1 %1259 }
 0x272   : > { %v1261_v31 = vadd.f32 %v1260_v29, %v1257_v28 }
 0x273   : > { %v1270_v32 = vpop.xlane.xlu0 %1269 }
 0x274   : > { %1263 = vst.msk [vmem:[%s1812_s28] sm:$0xff] %vm1215_vm6, %v1261_v31  ;;  %v1271_v33 = vadd.f32 %v1519_v30, %v1270_v32 }
 0x276   : > { %1520 = vst.msk [vmem:[%s1812_s28 + $0x8] sm:$0xff] %vm1215_vm6, %v1271_v33 }
 0x277 PF: > { %s20_s11 = sadd.s32 1, %s1594_s11   ;;  %s1847_s30 = smov %s1590_s10 }
 0x278   : > { %p17_p5 = scmp.ge.s32.totalorder %s20_s11, 4   ;;  %s1848_s10 = smov %s1850_s12 }
 0x27a   :  { %19 = sbr.rel (!%p17_p5) target bundleno = 2 (0x2), region = 128 }

</bundles_post_ra>
